<compile_context>
chip_gen: v7x
topology: tpu7x:2x2x1
jax: 0.10.0
libtpu: 0.0.40
codegen_flags: <defaults>
</compile_context>

<pallas_src>
import functools

import jax
import jax.numpy as jnp
from jax.experimental import pallas as pl
from jax.experimental.pallas import tpu as pltpu


def _wdsr_block_kernel(xp_ref, w1_ref, b1_ref, w2_ref, b2_ref, o_ref, *,
                       K, TH, H, W, WYp):
    """Fused o = conv2(relu(conv1(x))) * res_scale + x for one output row tile.

    (res_scale is pre-folded into w2/b2 by the wrapper.)

    xp_ref: (H + 4p, Wp, Cin)   x pre-padded by 2p in H / left, to Wp in W
    w1_ref: (K, K, Cin, Cmid)   HWIO
    b1_ref: (1, Cmid)
    w2_ref: (K, K, Cmid, Cout)  HWIO (already * res_scale)
    b2_ref: (1, Cout)           (already * res_scale)
    o_ref : (TH, W, Cout)       output row tile
    """
    p = K // 2
    Cin = xp_ref.shape[-1]
    Cmid = w1_ref.shape[-1]
    Cout = o_ref.shape[-1]
    HY = TH + 2 * p                        # y rows needed (with conv2 halo)

    r0 = pl.multiple_of(pl.program_id(1) * TH, TH)   # first output image row

    # Load the x row window once; every tap below is a static slice of it.
    xwin = xp_ref[pl.ds(r0, TH + 4 * p), :, :]       # (TH+4p, Wp, Cin)

    # ---- conv1 + bias + ReLU over the halo'd y window ---------------------
    # Each tap is a (HY*WYp, Cin) x (Cin, Cmid) MXU matmul accumulated in f32;
    # the accumulator is initialized from the first tap (no zeros pass).
    # TODO(synk): for bf16 deployments cast taps/weights to bf16 here (keep
    # preferred_element_type=f32); for very small Cin an im2col lane-concat
    # (contraction K*K*Cin) would cut MXU pushes by K^2.
    def conv1_tap(kh, kw):
        xs = xwin[kh:kh + HY, kw:kw + WYp, :].reshape(HY * WYp, Cin)
        return jnp.dot(xs, w1_ref[kh, kw], preferred_element_type=jnp.float32)

    y = conv1_tap(0, 0)
    for kh in range(K):
        for kw in range(K):
            if kh == 0 and kw == 0:
                continue
            y += conv1_tap(kh, kw)
    y = jnp.maximum(y + b1_ref[...], 0.0).reshape(HY, WYp, Cmid)

    # Rows/cols of this y window that fall outside the real image are conv2's
    # ZERO padding, not conv1 outputs (bias+ReLU make them nonzero): zero them
    # with a cheap (HY, WYp, 1) 0/1 mask broadcast along the lane (channel) dim.
    rows = jax.lax.broadcasted_iota(jnp.int32, (HY, WYp, 1), 0) + (r0 - p)
    cols = jax.lax.broadcasted_iota(jnp.int32, (HY, WYp, 1), 1)
    valid = (rows >= 0) & (rows < H) & (cols >= p) & (cols < W + p)
    y = y * valid.astype(y.dtype)

    # ---- conv2 (+ pre-scaled bias) + residual -----------------------------
    def conv2_tap(kh, kw):
        ys = y[kh:kh + TH, kw:kw + W, :].reshape(TH * W, Cmid)
        return jnp.dot(ys, w2_ref[kh, kw], preferred_element_type=jnp.float32)

    acc = conv2_tap(0, 0)
    for kh in range(K):
        for kw in range(K):
            if kh == 0 and kw == 0:
                continue
            acc += conv2_tap(kh, kw)
    acc = acc + b2_ref[...]

    # Residual comes straight from the already-resident padded x window.
    xres = xwin[2 * p:2 * p + TH, 2 * p:2 * p + W, :].astype(jnp.float32)
    o_ref[...] = (acc.reshape(TH, W, Cout) + xres).astype(o_ref.dtype)


def wdsr_block_forward(x_nchw, w1_oihw, b1, w2_oihw, b2, res_scale=1.0,
                       tile_h=8):
    """Pallas TPU implementation of Block.forward; x_nchw: (N, n_feats, H, W)."""
    N, C, H, W = x_nchw.shape
    Cmid = w1_oihw.shape[0]
    K = w1_oihw.shape[-1]
    assert K % 2 == 1, "even kernel sizes with pad=K//2 are not supported"
    p = K // 2

    # Row-tile height: largest divisor of H not exceeding tile_h.
    # TODO(synk): tune per chip (roughly half on v7x's 64 MiB VMEM) for very
    # large H/W/block_feats.
    TH = max(t for t in range(1, min(tile_h, H) + 1) if H % t == 0)
    # y window width = W + conv2 halo, rounded up to 8 sublanes so in-kernel
    # reshapes never touch the lane dim and keep the sublane dim 8-aligned.
    WYp = ((W + 2 * p + 7) // 8) * 8
    Wp = WYp + 2 * p                       # padded x width

    # Layout conversion + the single (small, n_feats-wide) halo pad of x.
    x_nhwc = jnp.transpose(x_nchw, (0, 2, 3, 1))
    xp = jnp.pad(x_nhwc,
                 ((0, 0), (2 * p, 2 * p), (2 * p, Wp - W - 2 * p), (0, 0)))
    w1_hwio = jnp.transpose(w1_oihw, (2, 3, 1, 0))
    # Fold res_scale into conv2's parameters (removes an in-kernel full mul).
    s = float(res_scale)
    w2_hwio = jnp.transpose(w2_oihw, (2, 3, 1, 0)) * s
    b2_scaled = b2 * s

    flops = 2 * N * H * W * K * K * (C * Cmid + Cmid * C)
    bytes_accessed = 4 * (xp.size + N * H * W * C + w1_hwio.size +
                          w2_hwio.size + b1.size + b2.size)

    kernel = functools.partial(_wdsr_block_kernel, K=K, TH=TH, H=H, W=W,
                               WYp=WYp)
    out_nhwc = pl.pallas_call(
        kernel,
        out_shape=jax.ShapeDtypeStruct((N, H, W, C), x_nchw.dtype),
        grid=(N, H // TH),
        in_specs=[
            # Padded input image: resident per batch element (constant in h).
            pl.BlockSpec((None, H + 4 * p, Wp, C), lambda n, h: (n, 0, 0, 0)),
            # Weights / biases: constant index maps -> loaded once, resident.
            pl.BlockSpec((K, K, C, Cmid), lambda n, h: (0, 0, 0, 0)),
            pl.BlockSpec((1, Cmid), lambda n, h: (0, 0)),
            pl.BlockSpec((K, K, Cmid, C), lambda n, h: (0, 0, 0, 0)),
            pl.BlockSpec((1, C), lambda n, h: (0, 0)),
        ],
        out_specs=pl.BlockSpec((None, TH, W, C), lambda n, h: (n, h, 0, 0)),
        compiler_params=pltpu.CompilerParams(
            dimension_semantics=("parallel", "parallel"),
            vmem_limit_bytes=32 * 1024 * 1024),
        cost_estimate=pl.CostEstimate(flops=flops, transcendentals=0,
                                      bytes_accessed=bytes_accessed),
    )(xp, w1_hwio, b1.reshape(1, Cmid), w2_hwio, b2_scaled.reshape(1, C))

    return jnp.transpose(out_nhwc, (0, 3, 1, 2))


def weight_norm(v, g):
    """PyTorch nn.utils.weight_norm (dim=0): w = g * v / ||v||, per out-chan."""
    norm = jnp.sqrt(jnp.sum(v * v, axis=(1, 2, 3), keepdims=True))
    return v * (g.reshape(-1, 1, 1, 1) / norm)


def _reference_block(x_nchw, w1, b1, w2, b2, res_scale):
    """Pure-JAX reference using lax.conv (NCHW/OIHW), mirrors the PyTorch code."""
    dn = ("NCHW", "OIHW", "NCHW")
    y = jax.lax.conv_general_dilated(x_nchw, w1, (1, 1), "SAME",
                                     dimension_numbers=dn)
    y = jnp.maximum(y + b1.reshape(1, -1, 1, 1), 0.0)
    z = jax.lax.conv_general_dilated(y, w2, (1, 1), "SAME",
                                     dimension_numbers=dn)
    z = z + b2.reshape(1, -1, 1, 1)
    return z * res_scale + x_nchw


if __name__ == "__main__":
    # Small shapes consistent with the module: n_feats=4, block_feats=32, k=3.
    n_feats, block_feats, K = 4, 32, 3
    N, H, W = 2, 16, 16
    res_scale = 1.0

    key = jax.random.PRNGKey(0)
    k_x, k_v1, k_g1, k_b1, k_v2, k_g2, k_b2 = jax.random.split(key, 7)

    x = jax.random.normal(k_x, (N, n_feats, H, W), jnp.float32)

    # Deterministic synthetic weight-norm parameters (v, g) and biases.
    v1 = 0.1 * jax.random.normal(k_v1, (block_feats, n_feats, K, K), jnp.float32)
    g1 = 1.0 + 0.1 * jax.random.normal(k_g1, (block_feats,), jnp.float32)
    b1 = 0.1 * jax.random.normal(k_b1, (block_feats,), jnp.float32)
    v2 = 0.1 * jax.random.normal(k_v2, (n_feats, block_feats, K, K), jnp.float32)
    g2 = 1.0 + 0.1 * jax.random.normal(k_g2, (n_feats,), jnp.float32)
    b2 = 0.1 * jax.random.normal(k_b2, (n_feats,), jnp.float32)

    w1 = weight_norm(v1, g1)
    w2 = weight_norm(v2, g2)

    fwd = jax.jit(lambda xx, a, ab, c, cb:
                  wdsr_block_forward(xx, a, ab, c, cb, res_scale))
    out = fwd(x, w1, b1, w2, b2)
    out = jax.block_until_ready(out)

    ref = _reference_block(x, w1, b1, w2, b2, res_scale)
    assert out.shape == x.shape and out.dtype == x.dtype
    assert jnp.allclose(out, ref, atol=1e-4, rtol=1e-4), \
        float(jnp.max(jnp.abs(out - ref)))

    print("KERNEL_OK")
</pallas_src>

<mosaic_0001>
module attributes {stable_mosaic.version = 11 : i64} {
  func.func @_wdsr_block_kernel(%arg0: i32, %arg1: i32, %arg2: memref<1x20x26x4xf32, #tpu.memory_space<vmem>>, %arg3: memref<3x3x4x32xf32, #tpu.memory_space<vmem>>, %arg4: memref<1x32xf32, #tpu.memory_space<vmem>>, %arg5: memref<3x3x32x4xf32, #tpu.memory_space<vmem>>, %arg6: memref<1x4xf32, #tpu.memory_space<vmem>>, %arg7: memref<1x8x16x4xf32, #tpu.memory_space<vmem>>) attributes {dimension_semantics = [#tpu.dimension_semantics<parallel>, #tpu.dimension_semantics<parallel>], iteration_bounds = array<i64: 2, 2>, scalar_prefetch = 0 : i64, scratch_operands = 0 : i64, tpu.core_type = #tpu.core_type<tc>, window_params = [{transform_indices = @transform_0, window_bounds = array<i64: 1, 20, 26, 4>}, {pipeline_mode = #tpu.pipeline_mode<synchronous>, transform_indices = @transform_1, window_bounds = array<i64: 3, 3, 4, 32>}, {pipeline_mode = #tpu.pipeline_mode<synchronous>, transform_indices = @transform_2, window_bounds = array<i64: 1, 32>}, {pipeline_mode = #tpu.pipeline_mode<synchronous>, transform_indices = @transform_3, window_bounds = array<i64: 3, 3, 32, 4>}, {pipeline_mode = #tpu.pipeline_mode<synchronous>, transform_indices = @transform_4, window_bounds = array<i64: 1, 4>}, {transform_indices = @transform_5, window_bounds = array<i64: 1, 8, 16, 4>}]} {
    %c8_i32 = arith.constant 8 : i32
    %0 = arith.muli %arg1, %c8_i32 : i32
    %1 = tpu.assume_multiple %0, 8 : i32
    %c0 = arith.constant 0 : index
    %2 = arith.index_cast %1 : i32 to index
    %c0_0 = arith.constant 0 : index
    %c0_1 = arith.constant 0 : index
    %3 = vector.load %arg2[%c0, %2, %c0_0, %c0_1] : memref<1x20x26x4xf32, #tpu.memory_space<vmem>>, vector<1x12x26x4xf32>
    %4 = vector.shape_cast %3 : vector<1x12x26x4xf32> to vector<12x26x4xf32>
    %5 = vector.extract_strided_slice %4 {offsets = [0, 0, 0], sizes = [10, 24, 4], strides = [1, 1, 1]} : vector<12x26x4xf32> to vector<10x24x4xf32>
    %6 = vector.shape_cast %5 : vector<10x24x4xf32> to vector<240x4xf32>
    %c0_2 = arith.constant 0 : index
    %c0_3 = arith.constant 0 : index
    %c0_4 = arith.constant 0 : index
    %c0_5 = arith.constant 0 : index
    %7 = vector.load %arg3[%c0_2, %c0_3, %c0_4, %c0_5] : memref<3x3x4x32xf32, #tpu.memory_space<vmem>>, vector<1x1x4x32xf32>
    %8 = vector.shape_cast %7 : vector<1x1x4x32xf32> to vector<4x32xf32>
    %cst = arith.constant dense<0.000000e+00> : vector<240x32xf32>
    %9 = tpu.matmul %6, %8, %cst {dimension_numbers = #tpu.dot_dimension_numbers<[1], [0], [0], [1], [0, 0, 1, 1], [], []>} : vector<240x4xf32>, vector<4x32xf32>, vector<240x32xf32> -> vector<240x32xf32>
    %10 = vector.extract_strided_slice %4 {offsets = [0, 1, 0], sizes = [10, 24, 4], strides = [1, 1, 1]} : vector<12x26x4xf32> to vector<10x24x4xf32>
    %11 = vector.shape_cast %10 : vector<10x24x4xf32> to vector<240x4xf32>
    %c0_6 = arith.constant 0 : index
    %c1 = arith.constant 1 : index
    %c0_7 = arith.constant 0 : index
    %c0_8 = arith.constant 0 : index
    %12 = vector.load %arg3[%c0_6, %c1, %c0_7, %c0_8] : memref<3x3x4x32xf32, #tpu.memory_space<vmem>>, vector<1x1x4x32xf32>
    %13 = vector.shape_cast %12 : vector<1x1x4x32xf32> to vector<4x32xf32>
    %cst_9 = arith.constant dense<0.000000e+00> : vector<240x32xf32>
    %14 = tpu.matmul %11, %13, %cst_9 {dimension_numbers = #tpu.dot_dimension_numbers<[1], [0], [0], [1], [0, 0, 1, 1], [], []>} : vector<240x4xf32>, vector<4x32xf32>, vector<240x32xf32> -> vector<240x32xf32>
    %15 = arith.addf %9, %14 : vector<240x32xf32>
    %16 = vector.extract_strided_slice %4 {offsets = [0, 2, 0], sizes = [10, 24, 4], strides = [1, 1, 1]} : vector<12x26x4xf32> to vector<10x24x4xf32>
    %17 = vector.shape_cast %16 : vector<10x24x4xf32> to vector<240x4xf32>
    %c0_10 = arith.constant 0 : index
    %c2 = arith.constant 2 : index
    %c0_11 = arith.constant 0 : index
    %c0_12 = arith.constant 0 : index
    %18 = vector.load %arg3[%c0_10, %c2, %c0_11, %c0_12] : memref<3x3x4x32xf32, #tpu.memory_space<vmem>>, vector<1x1x4x32xf32>
    %19 = vector.shape_cast %18 : vector<1x1x4x32xf32> to vector<4x32xf32>
    %cst_13 = arith.constant dense<0.000000e+00> : vector<240x32xf32>
    %20 = tpu.matmul %17, %19, %cst_13 {dimension_numbers = #tpu.dot_dimension_numbers<[1], [0], [0], [1], [0, 0, 1, 1], [], []>} : vector<240x4xf32>, vector<4x32xf32>, vector<240x32xf32> -> vector<240x32xf32>
    %21 = arith.addf %15, %20 : vector<240x32xf32>
    %22 = vector.extract_strided_slice %4 {offsets = [1, 0, 0], sizes = [10, 24, 4], strides = [1, 1, 1]} : vector<12x26x4xf32> to vector<10x24x4xf32>
    %23 = vector.shape_cast %22 : vector<10x24x4xf32> to vector<240x4xf32>
    %c1_14 = arith.constant 1 : index
    %c0_15 = arith.constant 0 : index
    %c0_16 = arith.constant 0 : index
    %c0_17 = arith.constant 0 : index
    %24 = vector.load %arg3[%c1_14, %c0_15, %c0_16, %c0_17] : memref<3x3x4x32xf32, #tpu.memory_space<vmem>>, vector<1x1x4x32xf32>
    %25 = vector.shape_cast %24 : vector<1x1x4x32xf32> to vector<4x32xf32>
    %cst_18 = arith.constant dense<0.000000e+00> : vector<240x32xf32>
    %26 = tpu.matmul %23, %25, %cst_18 {dimension_numbers = #tpu.dot_dimension_numbers<[1], [0], [0], [1], [0, 0, 1, 1], [], []>} : vector<240x4xf32>, vector<4x32xf32>, vector<240x32xf32> -> vector<240x32xf32>
    %27 = arith.addf %21, %26 : vector<240x32xf32>
    %28 = vector.extract_strided_slice %4 {offsets = [1, 1, 0], sizes = [10, 24, 4], strides = [1, 1, 1]} : vector<12x26x4xf32> to vector<10x24x4xf32>
    %29 = vector.shape_cast %28 : vector<10x24x4xf32> to vector<240x4xf32>
    %c1_19 = arith.constant 1 : index
    %c1_20 = arith.constant 1 : index
    %c0_21 = arith.constant 0 : index
    %c0_22 = arith.constant 0 : index
    %30 = vector.load %arg3[%c1_19, %c1_20, %c0_21, %c0_22] : memref<3x3x4x32xf32, #tpu.memory_space<vmem>>, vector<1x1x4x32xf32>
    %31 = vector.shape_cast %30 : vector<1x1x4x32xf32> to vector<4x32xf32>
    %cst_23 = arith.constant dense<0.000000e+00> : vector<240x32xf32>
    %32 = tpu.matmul %29, %31, %cst_23 {dimension_numbers = #tpu.dot_dimension_numbers<[1], [0], [0], [1], [0, 0, 1, 1], [], []>} : vector<240x4xf32>, vector<4x32xf32>, vector<240x32xf32> -> vector<240x32xf32>
    %33 = arith.addf %27, %32 : vector<240x32xf32>
    %34 = vector.extract_strided_slice %4 {offsets = [1, 2, 0], sizes = [10, 24, 4], strides = [1, 1, 1]} : vector<12x26x4xf32> to vector<10x24x4xf32>
    %35 = vector.shape_cast %34 : vector<10x24x4xf32> to vector<240x4xf32>
    %c1_24 = arith.constant 1 : index
    %c2_25 = arith.constant 2 : index
    %c0_26 = arith.constant 0 : index
    %c0_27 = arith.constant 0 : index
    %36 = vector.load %arg3[%c1_24, %c2_25, %c0_26, %c0_27] : memref<3x3x4x32xf32, #tpu.memory_space<vmem>>, vector<1x1x4x32xf32>
    %37 = vector.shape_cast %36 : vector<1x1x4x32xf32> to vector<4x32xf32>
    %cst_28 = arith.constant dense<0.000000e+00> : vector<240x32xf32>
    %38 = tpu.matmul %35, %37, %cst_28 {dimension_numbers = #tpu.dot_dimension_numbers<[1], [0], [0], [1], [0, 0, 1, 1], [], []>} : vector<240x4xf32>, vector<4x32xf32>, vector<240x32xf32> -> vector<240x32xf32>
    %39 = arith.addf %33, %38 : vector<240x32xf32>
    %40 = vector.extract_strided_slice %4 {offsets = [2, 0, 0], sizes = [10, 24, 4], strides = [1, 1, 1]} : vector<12x26x4xf32> to vector<10x24x4xf32>
    %41 = vector.shape_cast %40 : vector<10x24x4xf32> to vector<240x4xf32>
    %c2_29 = arith.constant 2 : index
    %c0_30 = arith.constant 0 : index
    %c0_31 = arith.constant 0 : index
    %c0_32 = arith.constant 0 : index
    %42 = vector.load %arg3[%c2_29, %c0_30, %c0_31, %c0_32] : memref<3x3x4x32xf32, #tpu.memory_space<vmem>>, vector<1x1x4x32xf32>
    %43 = vector.shape_cast %42 : vector<1x1x4x32xf32> to vector<4x32xf32>
    %cst_33 = arith.constant dense<0.000000e+00> : vector<240x32xf32>
    %44 = tpu.matmul %41, %43, %cst_33 {dimension_numbers = #tpu.dot_dimension_numbers<[1], [0], [0], [1], [0, 0, 1, 1], [], []>} : vector<240x4xf32>, vector<4x32xf32>, vector<240x32xf32> -> vector<240x32xf32>
    %45 = arith.addf %39, %44 : vector<240x32xf32>
    %46 = vector.extract_strided_slice %4 {offsets = [2, 1, 0], sizes = [10, 24, 4], strides = [1, 1, 1]} : vector<12x26x4xf32> to vector<10x24x4xf32>
    %47 = vector.shape_cast %46 : vector<10x24x4xf32> to vector<240x4xf32>
    %c2_34 = arith.constant 2 : index
    %c1_35 = arith.constant 1 : index
    %c0_36 = arith.constant 0 : index
    %c0_37 = arith.constant 0 : index
    %48 = vector.load %arg3[%c2_34, %c1_35, %c0_36, %c0_37] : memref<3x3x4x32xf32, #tpu.memory_space<vmem>>, vector<1x1x4x32xf32>
    %49 = vector.shape_cast %48 : vector<1x1x4x32xf32> to vector<4x32xf32>
    %cst_38 = arith.constant dense<0.000000e+00> : vector<240x32xf32>
    %50 = tpu.matmul %47, %49, %cst_38 {dimension_numbers = #tpu.dot_dimension_numbers<[1], [0], [0], [1], [0, 0, 1, 1], [], []>} : vector<240x4xf32>, vector<4x32xf32>, vector<240x32xf32> -> vector<240x32xf32>
    %51 = arith.addf %45, %50 : vector<240x32xf32>
    %52 = vector.extract_strided_slice %4 {offsets = [2, 2, 0], sizes = [10, 24, 4], strides = [1, 1, 1]} : vector<12x26x4xf32> to vector<10x24x4xf32>
    %53 = vector.shape_cast %52 : vector<10x24x4xf32> to vector<240x4xf32>
    %c2_39 = arith.constant 2 : index
    %c2_40 = arith.constant 2 : index
    %c0_41 = arith.constant 0 : index
    %c0_42 = arith.constant 0 : index
    %54 = vector.load %arg3[%c2_39, %c2_40, %c0_41, %c0_42] : memref<3x3x4x32xf32, #tpu.memory_space<vmem>>, vector<1x1x4x32xf32>
    %55 = vector.shape_cast %54 : vector<1x1x4x32xf32> to vector<4x32xf32>
    %cst_43 = arith.constant dense<0.000000e+00> : vector<240x32xf32>
    %56 = tpu.matmul %53, %55, %cst_43 {dimension_numbers = #tpu.dot_dimension_numbers<[1], [0], [0], [1], [0, 0, 1, 1], [], []>} : vector<240x4xf32>, vector<4x32xf32>, vector<240x32xf32> -> vector<240x32xf32>
    %57 = arith.addf %51, %56 : vector<240x32xf32>
    %c0_44 = arith.constant 0 : index
    %c0_45 = arith.constant 0 : index
    %58 = vector.load %arg4[%c0_44, %c0_45] : memref<1x32xf32, #tpu.memory_space<vmem>>, vector<1x32xf32>
    %59 = vector.broadcast %58 : vector<1x32xf32> to vector<240x32xf32>
    %60 = arith.addf %57, %59 : vector<240x32xf32>
    %cst_46 = arith.constant 0.000000e+00 : f32
    %61 = vector.broadcast %cst_46 : f32 to vector<240x32xf32>
    %62 = arith.maximumf %60, %61 : vector<240x32xf32>
    %63 = vector.shape_cast %62 : vector<240x32xf32> to vector<10x24x32xf32>
    %64 = tpu.iota {dimensions = array<i32: 0>} : vector<10x24x1xi32>
    %c1_i32 = arith.constant 1 : i32
    %65 = arith.subi %1, %c1_i32 : i32
    %66 = vector.broadcast %65 : i32 to vector<10x24x1xi32>
    %67 = arith.addi %64, %66 : vector<10x24x1xi32>
    %68 = tpu.iota {dimensions = array<i32: 1>} : vector<10x24x1xi32>
    %c0_i32 = arith.constant 0 : i32
    %69 = vector.broadcast %c0_i32 : i32 to vector<10x24x1xi32>
    %70 = arith.cmpi sge, %67, %69 : vector<10x24x1xi32>
    %c16_i32 = arith.constant 16 : i32
    %71 = vector.broadcast %c16_i32 : i32 to vector<10x24x1xi32>
    %72 = arith.cmpi slt, %67, %71 : vector<10x24x1xi32>
    %73 = arith.andi %70, %72 : vector<10x24x1xi1>
    %c1_i32_47 = arith.constant 1 : i32
    %74 = vector.broadcast %c1_i32_47 : i32 to vector<10x24x1xi32>
    %75 = arith.cmpi sge, %68, %74 : vector<10x24x1xi32>
    %76 = arith.andi %73, %75 : vector<10x24x1xi1>
    %c17_i32 = arith.constant 17 : i32
    %77 = vector.broadcast %c17_i32 : i32 to vector<10x24x1xi32>
    %78 = arith.cmpi slt, %68, %77 : vector<10x24x1xi32>
    %79 = arith.andi %76, %78 : vector<10x24x1xi1>
    %80 = arith.extui %79 : vector<10x24x1xi1> to vector<10x24x1xi32>
    %81 = arith.sitofp %80 : vector<10x24x1xi32> to vector<10x24x1xf32>
    %82 = vector.broadcast %81 : vector<10x24x1xf32> to vector<10x24x32xf32>
    %83 = arith.mulf %63, %82 : vector<10x24x32xf32>
    %84 = vector.extract_strided_slice %83 {offsets = [0, 0, 0], sizes = [8, 16, 32], strides = [1, 1, 1]} : vector<10x24x32xf32> to vector<8x16x32xf32>
    %85 = vector.shape_cast %84 : vector<8x16x32xf32> to vector<128x32xf32>
    %c0_48 = arith.constant 0 : index
    %c0_49 = arith.constant 0 : index
    %c0_50 = arith.constant 0 : index
    %c0_51 = arith.constant 0 : index
    %86 = vector.load %arg5[%c0_48, %c0_49, %c0_50, %c0_51] : memref<3x3x32x4xf32, #tpu.memory_space<vmem>>, vector<1x1x32x4xf32>
    %87 = vector.shape_cast %86 : vector<1x1x32x4xf32> to vector<32x4xf32>
    %cst_52 = arith.constant dense<0.000000e+00> : vector<128x4xf32>
    %88 = tpu.matmul %85, %87, %cst_52 {dimension_numbers = #tpu.dot_dimension_numbers<[1], [0], [0], [1], [0, 0, 1, 1], [], []>} : vector<128x32xf32>, vector<32x4xf32>, vector<128x4xf32> -> vector<128x4xf32>
    %89 = vector.extract_strided_slice %83 {offsets = [0, 1, 0], sizes = [8, 16, 32], strides = [1, 1, 1]} : vector<10x24x32xf32> to vector<8x16x32xf32>
    %90 = vector.shape_cast %89 : vector<8x16x32xf32> to vector<128x32xf32>
    %c0_53 = arith.constant 0 : index
    %c1_54 = arith.constant 1 : index
    %c0_55 = arith.constant 0 : index
    %c0_56 = arith.constant 0 : index
    %91 = vector.load %arg5[%c0_53, %c1_54, %c0_55, %c0_56] : memref<3x3x32x4xf32, #tpu.memory_space<vmem>>, vector<1x1x32x4xf32>
    %92 = vector.shape_cast %91 : vector<1x1x32x4xf32> to vector<32x4xf32>
    %cst_57 = arith.constant dense<0.000000e+00> : vector<128x4xf32>
    %93 = tpu.matmul %90, %92, %cst_57 {dimension_numbers = #tpu.dot_dimension_numbers<[1], [0], [0], [1], [0, 0, 1, 1], [], []>} : vector<128x32xf32>, vector<32x4xf32>, vector<128x4xf32> -> vector<128x4xf32>
    %94 = arith.addf %88, %93 : vector<128x4xf32>
    %95 = vector.extract_strided_slice %83 {offsets = [0, 2, 0], sizes = [8, 16, 32], strides = [1, 1, 1]} : vector<10x24x32xf32> to vector<8x16x32xf32>
    %96 = vector.shape_cast %95 : vector<8x16x32xf32> to vector<128x32xf32>
    %c0_58 = arith.constant 0 : index
    %c2_59 = arith.constant 2 : index
    %c0_60 = arith.constant 0 : index
    %c0_61 = arith.constant 0 : index
    %97 = vector.load %arg5[%c0_58, %c2_59, %c0_60, %c0_61] : memref<3x3x32x4xf32, #tpu.memory_space<vmem>>, vector<1x1x32x4xf32>
    %98 = vector.shape_cast %97 : vector<1x1x32x4xf32> to vector<32x4xf32>
    %cst_62 = arith.constant dense<0.000000e+00> : vector<128x4xf32>
    %99 = tpu.matmul %96, %98, %cst_62 {dimension_numbers = #tpu.dot_dimension_numbers<[1], [0], [0], [1], [0, 0, 1, 1], [], []>} : vector<128x32xf32>, vector<32x4xf32>, vector<128x4xf32> -> vector<128x4xf32>
    %100 = arith.addf %94, %99 : vector<128x4xf32>
    %101 = vector.extract_strided_slice %83 {offsets = [1, 0, 0], sizes = [8, 16, 32], strides = [1, 1, 1]} : vector<10x24x32xf32> to vector<8x16x32xf32>
    %102 = vector.shape_cast %101 : vector<8x16x32xf32> to vector<128x32xf32>
    %c1_63 = arith.constant 1 : index
    %c0_64 = arith.constant 0 : index
    %c0_65 = arith.constant 0 : index
    %c0_66 = arith.constant 0 : index
    %103 = vector.load %arg5[%c1_63, %c0_64, %c0_65, %c0_66] : memref<3x3x32x4xf32, #tpu.memory_space<vmem>>, vector<1x1x32x4xf32>
    %104 = vector.shape_cast %103 : vector<1x1x32x4xf32> to vector<32x4xf32>
    %cst_67 = arith.constant dense<0.000000e+00> : vector<128x4xf32>
    %105 = tpu.matmul %102, %104, %cst_67 {dimension_numbers = #tpu.dot_dimension_numbers<[1], [0], [0], [1], [0, 0, 1, 1], [], []>} : vector<128x32xf32>, vector<32x4xf32>, vector<128x4xf32> -> vector<128x4xf32>
    %106 = arith.addf %100, %105 : vector<128x4xf32>
    %107 = vector.extract_strided_slice %83 {offsets = [1, 1, 0], sizes = [8, 16, 32], strides = [1, 1, 1]} : vector<10x24x32xf32> to vector<8x16x32xf32>
    %108 = vector.shape_cast %107 : vector<8x16x32xf32> to vector<128x32xf32>
    %c1_68 = arith.constant 1 : index
    %c1_69 = arith.constant 1 : index
    %c0_70 = arith.constant 0 : index
    %c0_71 = arith.constant 0 : index
    %109 = vector.load %arg5[%c1_68, %c1_69, %c0_70, %c0_71] : memref<3x3x32x4xf32, #tpu.memory_space<vmem>>, vector<1x1x32x4xf32>
    %110 = vector.shape_cast %109 : vector<1x1x32x4xf32> to vector<32x4xf32>
    %cst_72 = arith.constant dense<0.000000e+00> : vector<128x4xf32>
    %111 = tpu.matmul %108, %110, %cst_72 {dimension_numbers = #tpu.dot_dimension_numbers<[1], [0], [0], [1], [0, 0, 1, 1], [], []>} : vector<128x32xf32>, vector<32x4xf32>, vector<128x4xf32> -> vector<128x4xf32>
    %112 = arith.addf %106, %111 : vector<128x4xf32>
    %113 = vector.extract_strided_slice %83 {offsets = [1, 2, 0], sizes = [8, 16, 32], strides = [1, 1, 1]} : vector<10x24x32xf32> to vector<8x16x32xf32>
    %114 = vector.shape_cast %113 : vector<8x16x32xf32> to vector<128x32xf32>
    %c1_73 = arith.constant 1 : index
    %c2_74 = arith.constant 2 : index
    %c0_75 = arith.constant 0 : index
    %c0_76 = arith.constant 0 : index
    %115 = vector.load %arg5[%c1_73, %c2_74, %c0_75, %c0_76] : memref<3x3x32x4xf32, #tpu.memory_space<vmem>>, vector<1x1x32x4xf32>
    %116 = vector.shape_cast %115 : vector<1x1x32x4xf32> to vector<32x4xf32>
    %cst_77 = arith.constant dense<0.000000e+00> : vector<128x4xf32>
    %117 = tpu.matmul %114, %116, %cst_77 {dimension_numbers = #tpu.dot_dimension_numbers<[1], [0], [0], [1], [0, 0, 1, 1], [], []>} : vector<128x32xf32>, vector<32x4xf32>, vector<128x4xf32> -> vector<128x4xf32>
    %118 = arith.addf %112, %117 : vector<128x4xf32>
    %119 = vector.extract_strided_slice %83 {offsets = [2, 0, 0], sizes = [8, 16, 32], strides = [1, 1, 1]} : vector<10x24x32xf32> to vector<8x16x32xf32>
    %120 = vector.shape_cast %119 : vector<8x16x32xf32> to vector<128x32xf32>
    %c2_78 = arith.constant 2 : index
    %c0_79 = arith.constant 0 : index
    %c0_80 = arith.constant 0 : index
    %c0_81 = arith.constant 0 : index
    %121 = vector.load %arg5[%c2_78, %c0_79, %c0_80, %c0_81] : memref<3x3x32x4xf32, #tpu.memory_space<vmem>>, vector<1x1x32x4xf32>
    %122 = vector.shape_cast %121 : vector<1x1x32x4xf32> to vector<32x4xf32>
    %cst_82 = arith.constant dense<0.000000e+00> : vector<128x4xf32>
    %123 = tpu.matmul %120, %122, %cst_82 {dimension_numbers = #tpu.dot_dimension_numbers<[1], [0], [0], [1], [0, 0, 1, 1], [], []>} : vector<128x32xf32>, vector<32x4xf32>, vector<128x4xf32> -> vector<128x4xf32>
    %124 = arith.addf %118, %123 : vector<128x4xf32>
    %125 = vector.extract_strided_slice %83 {offsets = [2, 1, 0], sizes = [8, 16, 32], strides = [1, 1, 1]} : vector<10x24x32xf32> to vector<8x16x32xf32>
    %126 = vector.shape_cast %125 : vector<8x16x32xf32> to vector<128x32xf32>
    %c2_83 = arith.constant 2 : index
    %c1_84 = arith.constant 1 : index
    %c0_85 = arith.constant 0 : index
    %c0_86 = arith.constant 0 : index
    %127 = vector.load %arg5[%c2_83, %c1_84, %c0_85, %c0_86] : memref<3x3x32x4xf32, #tpu.memory_space<vmem>>, vector<1x1x32x4xf32>
    %128 = vector.shape_cast %127 : vector<1x1x32x4xf32> to vector<32x4xf32>
    %cst_87 = arith.constant dense<0.000000e+00> : vector<128x4xf32>
    %129 = tpu.matmul %126, %128, %cst_87 {dimension_numbers = #tpu.dot_dimension_numbers<[1], [0], [0], [1], [0, 0, 1, 1], [], []>} : vector<128x32xf32>, vector<32x4xf32>, vector<128x4xf32> -> vector<128x4xf32>
    %130 = arith.addf %124, %129 : vector<128x4xf32>
    %131 = vector.extract_strided_slice %83 {offsets = [2, 2, 0], sizes = [8, 16, 32], strides = [1, 1, 1]} : vector<10x24x32xf32> to vector<8x16x32xf32>
    %132 = vector.shape_cast %131 : vector<8x16x32xf32> to vector<128x32xf32>
    %c2_88 = arith.constant 2 : index
    %c2_89 = arith.constant 2 : index
    %c0_90 = arith.constant 0 : index
    %c0_91 = arith.constant 0 : index
    %133 = vector.load %arg5[%c2_88, %c2_89, %c0_90, %c0_91] : memref<3x3x32x4xf32, #tpu.memory_space<vmem>>, vector<1x1x32x4xf32>
    %134 = vector.shape_cast %133 : vector<1x1x32x4xf32> to vector<32x4xf32>
    %cst_92 = arith.constant dense<0.000000e+00> : vector<128x4xf32>
    %135 = tpu.matmul %132, %134, %cst_92 {dimension_numbers = #tpu.dot_dimension_numbers<[1], [0], [0], [1], [0, 0, 1, 1], [], []>} : vector<128x32xf32>, vector<32x4xf32>, vector<128x4xf32> -> vector<128x4xf32>
    %136 = arith.addf %130, %135 : vector<128x4xf32>
    %c0_93 = arith.constant 0 : index
    %c0_94 = arith.constant 0 : index
    %137 = vector.load %arg6[%c0_93, %c0_94] : memref<1x4xf32, #tpu.memory_space<vmem>>, vector<1x4xf32>
    %138 = vector.broadcast %137 : vector<1x4xf32> to vector<128x4xf32>
    %139 = arith.addf %136, %138 : vector<128x4xf32>
    %140 = vector.extract_strided_slice %4 {offsets = [2, 2, 0], sizes = [8, 16, 4], strides = [1, 1, 1]} : vector<12x26x4xf32> to vector<8x16x4xf32>
    %141 = vector.shape_cast %139 : vector<128x4xf32> to vector<8x16x4xf32>
    %142 = arith.addf %141, %140 : vector<8x16x4xf32>
    %c0_95 = arith.constant 0 : index
    %c0_96 = arith.constant 0 : index
    %c0_97 = arith.constant 0 : index
    %c0_98 = arith.constant 0 : index
    %143 = vector.load %arg7[%c0_95, %c0_96, %c0_97, %c0_98] : memref<1x8x16x4xf32, #tpu.memory_space<vmem>>, vector<1x8x16x4xf32>
    %144 = vector.shape_cast %143 : vector<1x8x16x4xf32> to vector<8x16x4xf32>
    %145 = vector.shape_cast %142 : vector<8x16x4xf32> to vector<1x8x16x4xf32>
    tpu.vector_store %arg7[%c0_95, %c0_96, %c0_97, %c0_98], %145 {strides = array<i32>} : memref<1x8x16x4xf32, #tpu.memory_space<vmem>>, vector<1x8x16x4xf32>,
    return
  }
  func.func @transform_0(%arg0: i32, %arg1: i32) -> (i32, i32, i32, i32) {
    %c0_i32 = arith.constant 0 : i32
    %c0_i32_0 = arith.constant 0 : i32
    %c0_i32_1 = arith.constant 0 : i32
    %c0_i32_2 = arith.constant 0 : i32
    return %arg0, %c0_i32, %c0_i32_0, %c0_i32_1 : i32, i32, i32, i32
  }
  func.func @transform_1(%arg0: i32, %arg1: i32) -> (i32, i32, i32, i32) {
    %c0_i32 = arith.constant 0 : i32
    %c0_i32_0 = arith.constant 0 : i32
    %c0_i32_1 = arith.constant 0 : i32
    %c0_i32_2 = arith.constant 0 : i32
    %c0_i32_3 = arith.constant 0 : i32
    return %c0_i32, %c0_i32_0, %c0_i32_1, %c0_i32_2 : i32, i32, i32, i32
  }
  func.func @transform_2(%arg0: i32, %arg1: i32) -> (i32, i32) {
    %c0_i32 = arith.constant 0 : i32
    %c0_i32_0 = arith.constant 0 : i32
    %c0_i32_1 = arith.constant 0 : i32
    return %c0_i32, %c0_i32_0 : i32, i32
  }
  func.func @transform_3(%arg0: i32, %arg1: i32) -> (i32, i32, i32, i32) {
    %c0_i32 = arith.constant 0 : i32
    %c0_i32_0 = arith.constant 0 : i32
    %c0_i32_1 = arith.constant 0 : i32
    %c0_i32_2 = arith.constant 0 : i32
    %c0_i32_3 = arith.constant 0 : i32
    return %c0_i32, %c0_i32_0, %c0_i32_1, %c0_i32_2 : i32, i32, i32, i32
  }
  func.func @transform_4(%arg0: i32, %arg1: i32) -> (i32, i32) {
    %c0_i32 = arith.constant 0 : i32
    %c0_i32_0 = arith.constant 0 : i32
    %c0_i32_1 = arith.constant 0 : i32
    return %c0_i32, %c0_i32_0 : i32, i32
  }
  func.func @transform_5(%arg0: i32, %arg1: i32) -> (i32, i32, i32, i32) {
    %c0_i32 = arith.constant 0 : i32
    %c0_i32_0 = arith.constant 0 : i32
    %c0_i32_1 = arith.constant 0 : i32
    return %arg0, %arg1, %c0_i32, %c0_i32_0 : i32, i32, i32, i32
  }
}

</mosaic_0001>

<bundles_post_ra>
// kernel: _lambda_.1
= control target key start
LH: loop header
LB: loop body
LE: loop exit
PB: predicated region body
PF: predicated region fallthrough
CT: control target
= control target key end

     0   :  { %s7303_s18 = smov 0   ;;  %s7305_s19 = smov 0   ;;  %s9415_s0 = inlined_call_operand.vmem [shape: f32[2,20,26,4], index: 0, kind: input, shape index: {}]   ;;  %s9416_s1 = inlined_call_operand.vmem [shape: f32[3,3,4,32], index: 1, kind: input, shape index: {}]   ;;  %s9417_s2 = inlined_call_operand.vmem [shape: f32[1,32], index: 2, kind: input, shape index: {}]   ;;  %s9418_s3 = inlined_call_operand.vmem [shape: f32[3,3,32,4], index: 3, kind: input, shape index: {}]   ;;  %s9419_s4 = inlined_call_operand.vmem [shape: f32[1,4], index: 4, kind: input, shape index: {}]   ;;  %s9420_s5 = inlined_call_operand.vmem [shape: f32[2,16,16,4], index: 5, kind: output, shape index: {}]  }
   0x1   :  { %s7307_s20 = smov 0   ;;  %s7309_s21 = smov 0  }
   0x2   :  { %s7311_s22 = smov 0  }
   0x3 LB: > { %s24_s23 = sadd.s32 1, %s7262_s20  ;;  %s27_s24 = sadd.s32 1, %s7266_s21  ;;  %s7270_s22 = sphi %s7311_s22, %s15_s22   ;;  %s7266_s21 = sphi %s7309_s21, %s9607_s21   ;;  %s7262_s20 = sphi %s7307_s20, %s9606_s20   ;;  %s7258_s19 = sphi %s7305_s19, %s9605_s19   ;;  %s7254_s18 = sphi %s7303_s18, %s9604_s18  }
   0x4   : > { %p25_p0 = scmp.ge.s32.totalorder %s24_s23, 2  ;;  %p5073_p1 = scmp.ge.s32.totalorder %s7270_s22, 1 }
   0x5   : > { %p201_p2 = scmp.lt.s32.totalorder %s7270_s22, 5 }
   0x6   : > { %s9609_s23 = smov (%p25_p0, %s24_s23), 0  ;;  %s9611_s24 = smov (!%p25_p0, %s27_s24), %s7266_s21 }
   0x7   : > { %p202_p3 = pnand %p5073_p1, %p201_p2  ;;  %p29_p4 = scmp.ge.s32.totalorder %s9611_s24, 2 }
   0x9   : > { %s9613_s24 = smov (%p29_p4, %s9611_s24), 0  ;;  %205 = sbr.rel (%p202_p3) target bundleno = 1131 (0x46b), region = 40 }
  0x10   : > { %vm476_vm0 = vcmask 1043456   ;;  %v5144_v0 = vld [vmem:[%s9416_s1 + $0x8] sm:$0xf]  ;;  %p234_p5 = scmp.lt.s32.totalorder %s7258_s19, 1  ;;  %v5176_v1 = vld [vmem:[%s9416_s1 + $0xc] sm:$0xf] }
  0x11   : > { %6133 = vmatprep.subr.msk.mxu0 %vm476_vm0, %v5144_v0  ;;  %s5579_s30 = sshll.u32 %s7254_s18, 8  ;;  %vm415_vm1 = vcmask 31744   ;;  %vm973_vm2 = vcmask 1045504   ;;  %v7397_v22 = vld [vmem:[%s9416_s1 + $0x10] sm:$0xf]  ;;  %vm342_vm3 = vcmask 1046528  }
  0x12   : > { %6134 = vmatpush3.msk.msra.mxu0 %vm476_vm0, %v5144_v0  ;;  %s9615_s19 = smov (!%p234_p5, %s7258_s19), 1  ;;  %s8435_s25 = sshll.u32 %s7254_s18, 3 }
  0x13   : > { %6180 = vmatprep.subr.msk.mxu0 %vm476_vm0, %v5176_v1  ;;  %s7190_s29 = smul.u32 640, %s9615_s19  ;;  %s5369_s26 = sadd.s32 4294967295, %s8435_s25 }
  0x14   : > { %p242_p6 = scmp.lt.s32.totalorder %s8435_s25, 15  ;;  %s5077_s11 = sshll.u32 %s9615_s19, 5 }
  0x15   : > { %s238_s8 = scalar_lea.vmem %s9415_s0, %s7190_s29 }
  0x16   : > { %s7351_s9 = scalar_lea.vmem %s238_s8, %s5579_s30  ;;  %s9617_s25 = smov (!%p242_p6, %s8435_s25), 15 }
  0x17   : > { %v7354_v2 = vld [vmem:[%s7351_s9] sm:$0xff]  ;;  %v7357_v3 = vld [vmem:[%s7351_s9 + $0x8] sm:$0xff]  ;;  %v7360_v4 = vld [vmem:[%s7351_s9 + $0x10] sm:$0xff]  ;;  %s5076_s10 = sshll.u32 %s9617_s25, 1 }
  0x18   : > { %v974_v5 = vrot.slane %v7354_v2, 2  ;;  %v975_v6 = vrot.slane %v7357_v3, 2  ;;  %v977_v7 = vrot.slane %v7360_v4, 2  ;;  %v7366_v8 = vld [vmem:[%s7351_s9 + $0x18] sm:$0x3]  ;;  %v7369_v9 = vld [vmem:[%s7351_s9 + $0x20] sm:$0xff]  ;;  %s246_s12 = sadd.s32 %s5077_s11, %s5076_s10 }
  0x19   : > { %v979_v10 = vrot.slane %v7366_v8, 2  ;;  %v7373_v11 = vld [vmem:[%s7351_s9 + $0x28] sm:$0xff]  ;;  %v981_v12 = vrot.slane %v7369_v9, 2  ;;  %v7377_v13 = vld [vmem:[%s7351_s9 + $0x30] sm:$0xff]  ;;  %v7384_v18 = vld [vmem:[%s7351_s9 + $0x38] sm:$0x3] }
  0x1a   : > { %v976_v14 = vsel %vm973_vm2, %v974_v5, %v975_v6  ;;  %v978_v15 = vsel %vm973_vm2, %v975_v6, %v977_v7  ;;  %v982_v16 = vrot.slane %v7373_v11, 2  ;;  %v984_v17 = vrot.slane %v7377_v13, 2  ;;  %v7389_v20 = vld [vmem:[%s7351_s9 + $0x40] sm:$0xff]  ;;  %v7392_v21 = vld [vmem:[%s7351_s9 + $0x48] sm:$0xff]  ;;  %v7412_v28 = vld [vmem:[%s7351_s9 + $0x50] sm:$0xff] }
  0x1b   : > { %6135 = vmatprep.mubr.msk.f32.mxu0 %vm415_vm1, %v976_v14  ;;  %v980_v19 = vsel %vm973_vm2, %v977_v7, %v979_v10  ;;  %v986_v24 = vrot.slane %v7384_v18, 2  ;;  %v988_v26 = vrot.slane %v7389_v20, 2  ;;  %v989_v27 = vrot.slane %v7392_v21, 2  ;;  %v7417_v29 = vld [vmem:[%s7351_s9 + $0x58] sm:$0x3]  ;;  %v7432_v34 = vld [vmem:[%s7351_s9 + $0x60] sm:$0xff] }
  0x1c   : > { %6136 = vmatmul.mubr.msk.f32.vlgmr.msra.gmra.mrb[0].mxu0 %vm415_vm1, %v978_v15  ;;  %v7403_v23 = vsel %vm973_vm2, %v981_v12, %v982_v16  ;;  %v7407_v25 = vsel %vm973_vm2, %v982_v16, %v984_v17  ;;  %v991_v31 = vrot.slane %v7412_v28, 2  ;;  %v993_v33 = vrot.slane %v7417_v29, 2  ;;  %v7435_v35 = vld [vmem:[%s7351_s9 + $0x68] sm:$0xff]  ;;  %v7438_v36 = vld [vmem:[%s7351_s9 + $0x70] sm:$0xff]  ;;  %v7454_v42 = vld [vmem:[%s7351_s9 + $0x78] sm:$0x3] }
  0x1d   : > { %6181 = vmatpush3.msk.msra.mxu0 %vm476_vm0, %v5176_v1  ;;  %6138 = vmatprep.mubr.msk.f32.mxu0 %vm415_vm1, %v980_v19  ;;  %v7424_v30 = vsel %vm973_vm2, %v984_v17, %v986_v24  ;;  %v7428_v32 = vsel %vm973_vm2, %v988_v26, %v989_v27  ;;  %v995_v38 = vrot.slane %v7432_v34, 2  ;;  %v996_v39 = vrot.slane %v7435_v35, 2  ;;  %v7457_v43 = vld [vmem:[%s7351_s9 + $0x80] sm:$0xff]  ;;  %v7460_v44 = vld [vmem:[%s7351_s9 + $0x88] sm:$0xff]  ;;  %v7476_v50 = vld [vmem:[%s7351_s9 + $0x90] sm:$0xff] }
  0x1e   : > { %6227 = vmatprep.subr.msk.mxu0 %vm476_vm0, %v7397_v22  ;;  %9479 = vst [vmem:[#allocation2_spill] sm:$0xff] %v7428_v32  ;;  %v7445_v37 = vsel %vm973_vm2, %v989_v27, %v991_v31  ;;  %v7450_v40 = vsel %vm973_vm2, %v991_v31, %v993_v33  ;;  %v998_v41 = vrot.slane %v7438_v36, 2  ;;  %v1000_v46 = vrot.slane %v7454_v42, 2  ;;  %v7479_v51 = vld [vmem:[%s7351_s9 + $0x98] sm:$0x3]  ;;  %v7494_v56 = vld [vmem:[%s7351_s9 + $0xa0] sm:$0xff] }
  0x1f   : > { %9480 = vst [vmem:[#allocation3_spill] sm:$0xff] %v7445_v37  ;;  %v7467_v45 = vsel %vm973_vm2, %v995_v38, %v996_v39  ;;  %v1002_v48 = vrot.slane %v7457_v43, 2  ;;  %v1003_v49 = vrot.slane %v7460_v44, 2  ;;  %v1005_v53 = vrot.slane %v7476_v50, 2  ;;  %v7497_v57 = vld [vmem:[%s7351_s9 + $0xa8] sm:$0xff]  ;;  %v7500_v58 = vld [vmem:[%s7351_s9 + $0xb0] sm:$0xff] }
  0x20   : > { %6139 = vmatmul.mubr.msk.f32.gmra.mrb[2].mxu0 %vm415_vm1, %v7403_v23  ;;  %9481 = vst [vmem:[#allocation4_spill] sm:$0xff] %v7467_v45  ;;  %v7471_v47 = vsel %vm973_vm2, %v996_v39, %v998_v41  ;;  %v7486_v52 = vsel %vm973_vm2, %v998_v41, %v1000_v46  ;;  %v1007_v55 = vrot.slane %v7479_v51, 2  ;;  %v1009_v60 = vrot.slane %v7494_v56, 2  ;;  %v7516_v0 = vld [vmem:[%s7351_s9 + $0xb8] sm:$0x3]  ;;  %v7519_v1 = vld [vmem:[%s7351_s9 + $0xc0] sm:$0xff] }
  0x21   : > { %6141 = vmatprep.mubr.msk.f32.mxu0 %vm415_vm1, %v7407_v25  ;;  %9482 = vst [vmem:[#allocation5_spill] sm:$0xff] %v7471_v47  ;;  %v7490_v54 = vsel %vm973_vm2, %v1002_v48, %v1003_v49  ;;  %v7507_v59 = vsel %vm973_vm2, %v1003_v49, %v1005_v53  ;;  %v1010_v61 = vrot.slane %v7497_v57, 2  ;;  %v1012_v63 = vrot.slane %v7500_v58, 2  ;;  %v7522_v5 = vld [vmem:[%s7351_s9 + $0xc8] sm:$0xff]  ;;  %v7538_v15 = vld [vmem:[%s7351_s9 + $0xd0] sm:$0xff]  ;;  %v7556_v27 = vld [vmem:[%s7351_s9 + $0xe0] sm:$0xff] }
  0x22   : > { %9483 = vst [vmem:[#allocation6_spill] sm:$0xff] %v7490_v54  ;;  %9484 = vst [vmem:[#allocation7_spill] sm:$0xff] %v7507_v59  ;;  %v7512_v62 = vsel %vm973_vm2, %v1005_v53, %v1007_v55  ;;  %v1014_v7 = vrot.slane %v7516_v0, 2  ;;  %v1016_v12 = vrot.slane %v7519_v1, 2  ;;  %v1017_v14 = vrot.slane %v7522_v5, 2  ;;  %v7559_v31 = vld [vmem:[%s7351_s9 + $0xe8] sm:$0xff] }
  0x23   : > { %9485 = vst [vmem:[#allocation8_spill] sm:$0xff] %v7512_v62  ;;  %v7529_v6 = vsel %vm973_vm2, %v1009_v60, %v1010_v61  ;;  %v7533_v10 = vsel %vm973_vm2, %v1010_v61, %v1012_v63  ;;  %v7541_v16 = vld [vmem:[%s7351_s9 + $0xd8] sm:$0x3]  ;;  %v1019_v19 = vrot.slane %v7538_v15, 2  ;;  %v7562_v33 = vld [vmem:[%s7351_s9 + $0xf0] sm:$0xff]  ;;  %v1023_v39 = vrot.slane %v7556_v27, 2 }
  0x24   : > { %6142 = vmatmul.mubr.msk.f32.gmra.mrb[4].mxu0 %vm415_vm1, %v7424_v30  ;;  %9486 = vst [vmem:[#allocation9_spill] sm:$0xff] %v7529_v6  ;;  %9487 = vst [vmem:[#allocation10_spill] sm:$0xff] %v7533_v10  ;;  %v7548_v17 = vsel %vm973_vm2, %v1012_v63, %v1014_v7  ;;  %v7552_v24 = vsel %vm973_vm2, %v1016_v12, %v1017_v14  ;;  %v1021_v26 = vrot.slane %v7541_v16, 2  ;;  %v1024_v41 = vrot.slane %v7559_v31, 2  ;;  %v7578_v49 = vld [vmem:[%s7351_s9 + $0xf8] sm:$0x3] }
  0x25   : > { %6144 = vmatprep.mubr.msk.f32.mxu0 %vm415_vm1, %v7428_v32  ;;  %9488 = vst [vmem:[#allocation11_spill] sm:$0xff] %v7548_v17  ;;  %9489 = vst [vmem:[#allocation12_spill] sm:$0xff] %v7552_v24  ;;  %v7569_v38 = vsel %vm973_vm2, %v1017_v14, %v1019_v19  ;;  %v1026_v48 = vrot.slane %v7562_v33, 2  ;;  %v7581_v53 = vld [vmem:[%s7351_s9 + $0x100] sm:$0xff]  ;;  %v7584_v55 = vld [vmem:[%s7351_s9 + $0x108] sm:$0xff]  ;;  %v1028_v61 = vrot.slane %v7578_v49, 2 }
  0x26   : > { %9490 = vst [vmem:[#allocation13_spill] sm:$0xff] %v7569_v38  ;;  %v7574_v46 = vsel %vm973_vm2, %v1019_v19, %v1021_v26  ;;  %v7591_v60 = vsel %vm973_vm2, %v1023_v39, %v1024_v41  ;;  %v1030_v7 = vrot.slane %v7581_v53, 2  ;;  %v1031_v12 = vrot.slane %v7584_v55, 2  ;;  %v7600_v14 = vld [vmem:[%s7351_s9 + $0x110] sm:$0xff]  ;;  %v7603_v19 = vld [vmem:[%s7351_s9 + $0x118] sm:$0x3] }
  0x27   : > { %9491 = vst [vmem:[#allocation14_spill] sm:$0xff] %v7574_v46  ;;  %9492 = vst [vmem:[#allocation15_spill] sm:$0xff] %v7591_v60  ;;  %v7595_v63 = vsel %vm973_vm2, %v1024_v41, %v1026_v48  ;;  %v7610_v26 = vsel %vm973_vm2, %v1026_v48, %v1028_v61  ;;  %v1033_v39 = vrot.slane %v7600_v14, 2 }
  0x28   : > { %6145 = vmatmul.mubr.msk.f32.gmra.mrb[6].mxu0 %vm415_vm1, %v7445_v37  ;;  %9493 = vst [vmem:[#allocation16_spill] sm:$0xff] %v7595_v63  ;;  %9494 = vst [vmem:[#allocation17_spill] sm:$0xff] %v7610_v26  ;;  %v7614_v41 = vsel %vm973_vm2, %v1030_v7, %v1031_v12 }
  0x29   : > { %6147 = vmatprep.mubr.msk.f32.mxu0 %vm415_vm1, %v7450_v40  ;;  %9495 = vst [vmem:[#allocation18_spill] sm:$0xff] %v7614_v41  ;;  %v7631_v48 = vsel %vm973_vm2, %v1031_v12, %v1033_v39 }
  0x2a   : > { %9496 = vst [vmem:[#allocation19_spill] sm:$0xff] %v7631_v48 }
  0x2c   : > { %6148 = vmatmul.mubr.msk.f32.gmra.mrb[8].mxu0 %vm415_vm1, %v7467_v45 }
  0x2d   : > { %6150 = vmatprep.mubr.msk.f32.mxu0 %vm415_vm1, %v7471_v47 }
  0x30   : > { %6151 = vmatmul.mubr.msk.f32.gmra.mrb[10].mxu0 %vm415_vm1, %v7486_v52 }
  0x31   : > { %6153 = vmatprep.mubr.msk.f32.mxu0 %vm415_vm1, %v7490_v54 }
  0x34   : > { %6154 = vmatmul.mubr.msk.f32.gmra.mrb[12].mxu0 %vm415_vm1, %v7507_v59  ;;  %v358_v59 = vrot.slane %v7392_v21, 1 }
  0x35   : > { %6156 = vmatprep.mubr.msk.f32.mxu0 %vm415_vm1, %v7512_v62  ;;  %v348_v62 = vrot.slane %v7366_v8, 1  ;;  %v357_v8 = vrot.slane %v7389_v20, 1 }
  0x38   : > { %6157 = vmatmul.mubr.msk.f32.gmra.mrb[14].mxu0 %vm415_vm1, %v7529_v6  ;;  %v353_v6 = vrot.slane %v7377_v13, 1 }
  0x39   : > { %6159 = vmatprep.mubr.msk.f32.mxu0 %vm415_vm1, %v7533_v10  ;;  %v7640_v10 = vld [vmem:[%s7351_s9 + $0x138] sm:$0x3] }
  0x3c   : > { %6160 = vmatmul.mubr.msk.f32.gmra.mrb[16].mxu0 %vm415_vm1, %v7548_v17  ;;  %v7624_v17 = vld [vmem:[%s7351_s9 + $0x130] sm:$0xff] }
  0x3d   : > { %6162 = vmatprep.mubr.msk.f32.mxu0 %vm415_vm1, %v7552_v24  ;;  %v7621_v24 = vld [vmem:[%s7351_s9 + $0x128] sm:$0xff] }
  0x3e   : > { %v1038_v7 = vrot.slane %v7621_v24, 2 }
  0x40   : > { %6163 = vmatmul.mubr.msk.f32.gmra.mrb[18].mxu0 %vm415_vm1, %v7569_v38  ;;  %v7618_v38 = vld [vmem:[%s7351_s9 + $0x120] sm:$0xff] }
  0x41   : > { %6165 = vmatprep.mubr.msk.f32.mxu0 %vm415_vm1, %v7574_v46  ;;  %v1035_v46 = vrot.slane %v7603_v19, 2  ;;  %v1037_v61 = vrot.slane %v7618_v38, 2 }
  0x43   : > { %v7647_v12 = vsel %vm973_vm2, %v1037_v61, %v1038_v7  ;;  %v346_v61 = vrot.slane %v7360_v4, 1 }
  0x44   : > { %6166 = vmatmul.mubr.msk.f32.gmra.mrb[20].mxu0 %vm415_vm1, %v7591_v60  ;;  %v1040_v60 = vrot.slane %v7624_v17, 2  ;;  %9498 = vst [vmem:[#allocation21_spill] sm:$0xff] %v7647_v12 }
  0x45   : > { %6168 = vmatprep.mubr.msk.f32.mxu0 %vm415_vm1, %v7595_v63  ;;  %v7636_v63 = vsel %vm973_vm2, %v1033_v39, %v1035_v46  ;;  %v7667_v39 = vld [vmem:[%s9416_s1 + $0x14] sm:$0xf] }
  0x46   : > { %9497 = vst [vmem:[#allocation20_spill] sm:$0xff] %v7636_v63 }
  0x48   : > { %6169 = vmatmul.mubr.msk.f32.gmra.mrb[22].mxu0 %vm415_vm1, %v7610_v26  ;;  %v7651_v26 = vsel %vm973_vm2, %v1038_v7, %v1040_v60  ;;  %v7732_v7 = vld [vmem:[%s7351_s9 + $0x140] sm:$0xff] }
  0x49   : > { %6171 = vmatprep.mubr.msk.f32.mxu0 %vm415_vm1, %v7614_v41  ;;  %v1042_v41 = vrot.slane %v7640_v10, 2  ;;  %9499 = vst [vmem:[#allocation22_spill] sm:$0xff] %v7651_v26 }
  0x4b   : > { %v7658_v46 = vsel %vm973_vm2, %v1040_v60, %v1042_v41  ;;  %v344_v60 = vrot.slane %v7357_v3, 1  ;;  %v5081_v41 = vld [vmem:[%s9416_s1 + $0x4] sm:$0xf] }
  0x4c   : > { %6172 = vmatmul.mubr.msk.f32.gmra.mrb[24].mxu0 %vm415_vm1, %v7631_v48  ;;  %9500 = vst [vmem:[#allocation23_spill] sm:$0xff] %v7658_v46  ;;  %6039 = vmatprep.subr.msk.mxu1 %vm476_vm0, %v5081_v41 }
  0x4d   : > { %6174 = vmatprep.mubr.msk.f32.mxu0 %vm415_vm1, %v7636_v63  ;;  %v351_v63 = vrot.slane %v7373_v11, 1  ;;  %6040 = vmatpush3.msk.msra.mxu1 %vm476_vm0, %v5081_v41  ;;  %v347_v48 = vsel %vm342_vm3, %v344_v60, %v346_v61  ;;  %v349_v41 = vsel %vm342_vm3, %v346_v61, %v348_v62  ;;  %v7775_v61 = vld [vmem:[%s9416_s1 + $0x18] sm:$0xf] }
  0x50   : > { %6175 = vmatmul.mubr.msk.f32.gmra.mrb[26].mxu0 %vm415_vm1, %v7647_v12  ;;  %v350_v12 = vrot.slane %v7369_v9, 1 }
  0x51   : > { %6177 = vmatprep.mubr.msk.f32.mxu0 %vm415_vm1, %v7651_v26  ;;  %v7737_v26 = vld [vmem:[%s7351_s9 + $0x148] sm:$0xff] }
  0x54   : > { %6178 = vmatmul.mubr.msk.f32.gmra.mrb[28].mxu0 %vm415_vm1, %v7658_v46 }
  0x55   : > { %6182 = vmatprep.mubr.msk.f32.mxu0 %vm415_vm1, %v7369_v9 }
  0x58   : > { %6183 = vmatmul.mubr.msk.f32.vlgmr.msra.gmra.mrb[0].mxu0 %vm415_vm1, %v7373_v11 }
  0x59   : > { %6228 = vmatpush3.msk.msra.mxu0 %vm476_vm0, %v7397_v22  ;;  %6185 = vmatprep.mubr.msk.f32.mxu0 %vm415_vm1, %v7377_v13  ;;  %v343_v22 = vrot.slane %v7354_v2, 1 }
  0x5a   : > { %6274 = vmatprep.subr.msk.mxu0 %vm476_vm0, %v7667_v39 }
  0x5b   : > { %v345_v46 = vsel %vm342_vm3, %v343_v22, %v344_v60  ;;  %v7752_v22 = vld [vmem:[%s7351_s9 + $0x150] sm:$0xff]  ;;  %v355_v60 = vrot.slane %v7384_v18, 1  ;;  %v360_v18 = vrot.slane %v7412_v28, 1 }
  0x5c   : > { %6186 = vmatmul.mubr.msk.f32.gmra.mrb[2].mxu0 %vm415_vm1, %v7389_v20  ;;  %6041 = vmatprep.mubr.msk.f32.mxu1 %vm415_vm1, %v345_v46  ;;  %v352_v46 = vsel %vm342_vm3, %v350_v12, %v351_v63  ;;  %v7769_v12 = vsel %vm342_vm3, %v357_v8, %v358_v59  ;;  %v371_v8 = vrot.slane %v7457_v43, 1 }
  0x5d   : > { %6188 = vmatprep.mubr.msk.f32.mxu0 %vm415_vm1, %v7392_v21  ;;  %6042 = vmatmul.mubr.msk.f32.vlgmr.msra.gmra.mrb[0].mxu1 %vm415_vm1, %v347_v48  ;;  %v354_v48 = vsel %vm342_vm3, %v351_v63, %v353_v6  ;;  %v356_v62 = vsel %vm342_vm3, %v353_v6, %v355_v60  ;;  %v362_v63 = vrot.slane %v7417_v29, 1  ;;  %v7785_v6 = vsel %vm342_vm3, %v358_v59, %v360_v18 }
  0x5e   : > { %6044 = vmatprep.mubr.msk.f32.mxu1 %vm415_vm1, %v349_v41  ;;  %v364_v29 = vrot.slane %v7432_v34, 1  ;;  %v365_v41 = vrot.slane %v7435_v35, 1  ;;  %v367_v60 = vrot.slane %v7438_v36, 1 }
  0x60   : > { %6189 = vmatmul.mubr.msk.f32.gmra.mrb[4].mxu0 %vm415_vm1, %v7412_v28  ;;  %v7804_v59 = vsel %vm342_vm3, %v364_v29, %v365_v41  ;;  %v376_v29 = vrot.slane %v7479_v51, 1 }
  0x61   : > { %6191 = vmatprep.mubr.msk.f32.mxu0 %vm415_vm1, %v7432_v34  ;;  %6045 = vmatmul.mubr.msk.f32.gmra.mrb[2].mxu1 %vm415_vm1, %v352_v46 }
  0x62   : > { %6047 = vmatprep.mubr.msk.f32.mxu1 %vm415_vm1, %v354_v48 }
  0x64   : > { %6192 = vmatmul.mubr.msk.f32.gmra.mrb[6].mxu0 %vm415_vm1, %v7435_v35 }
  0x65   : > { %6194 = vmatprep.mubr.msk.f32.mxu0 %vm415_vm1, %v7438_v36  ;;  %6048 = vmatmul.mubr.msk.f32.gmra.mrb[4].mxu1 %vm415_vm1, %v356_v62 }
  0x66   : > { %6050 = vmatprep.mubr.msk.f32.mxu1 %vm415_vm1, %v7769_v12 }
  0x68   : > { %6195 = vmatmul.mubr.msk.f32.gmra.mrb[8].mxu0 %vm415_vm1, %v7457_v43 }
  0x69   : > { %6197 = vmatprep.mubr.msk.f32.mxu0 %vm415_vm1, %v7460_v44  ;;  %6051 = vmatmul.mubr.msk.f32.gmra.mrb[6].mxu1 %vm415_vm1, %v7785_v6 }
  0x6c   : > { %6198 = vmatmul.mubr.msk.f32.gmra.mrb[10].mxu0 %vm415_vm1, %v7476_v50 }
  0x6d   : > { %6200 = vmatprep.mubr.msk.f32.mxu0 %vm415_vm1, %v7494_v56 }
  0x70   : > { %6201 = vmatmul.mubr.msk.f32.gmra.mrb[12].mxu0 %vm415_vm1, %v7497_v57 }
  0x71   : > { %6203 = vmatprep.mubr.msk.f32.mxu0 %vm415_vm1, %v7500_v58 }
  0x74   : > { %6204 = vmatmul.mubr.msk.f32.gmra.mrb[14].mxu0 %vm415_vm1, %v7519_v1 }
  0x75   : > { %6206 = vmatprep.mubr.msk.f32.mxu0 %vm415_vm1, %v7522_v5 }
  0x78   : > { %6207 = vmatmul.mubr.msk.f32.gmra.mrb[16].mxu0 %vm415_vm1, %v7538_v15 }
  0x79   : > { %6209 = vmatprep.mubr.msk.f32.mxu0 %vm415_vm1, %v7556_v27 }
  0x7c   : > { %6210 = vmatmul.mubr.msk.f32.gmra.mrb[18].mxu0 %vm415_vm1, %v7559_v31 }
  0x7d   : > { %6212 = vmatprep.mubr.msk.f32.mxu0 %vm415_vm1, %v7562_v33 }
  0x80   : > { %6213 = vmatmul.mubr.msk.f32.gmra.mrb[20].mxu0 %vm415_vm1, %v7581_v53 }
  0x81   : > { %6215 = vmatprep.mubr.msk.f32.mxu0 %vm415_vm1, %v7584_v55 }
  0x84   : > { %6216 = vmatmul.mubr.msk.f32.gmra.mrb[22].mxu0 %vm415_vm1, %v7600_v14 }
  0x85   : > { %6218 = vmatprep.mubr.msk.f32.mxu0 %vm415_vm1, %v7618_v38 }
  0x88   : > { %6219 = vmatmul.mubr.msk.f32.gmra.mrb[24].mxu0 %vm415_vm1, %v7621_v24 }
  0x89   : > { %6221 = vmatprep.mubr.msk.f32.mxu0 %vm415_vm1, %v7624_v17 }
  0x8c   : > { %6222 = vmatmul.mubr.msk.f32.gmra.mrb[26].mxu0 %vm415_vm1, %v7732_v7 }
  0x8d   : > { %6224 = vmatprep.mubr.msk.f32.mxu0 %vm415_vm1, %v7737_v26 }
  0x90   : > { %6225 = vmatmul.mubr.msk.f32.gmra.mrb[28].mxu0 %vm415_vm1, %v7752_v22 }
  0x91   : > { %6229 = vmatprep.mubr.msk.f32.mxu0 %vm415_vm1, %v352_v46  ;;  %v7792_v46 = vsel %vm342_vm3, %v360_v18, %v362_v63  ;;  %v374_v18 = vrot.slane %v7476_v50, 1 }
  0x92   : > { %6053 = vmatprep.mubr.msk.f32.mxu1 %vm415_vm1, %v7792_v46 }
  0x93   : > { %6054 = vmatmul.mubr.msk.f32.gmra.mrb[8].mxu1 %vm415_vm1, %v7804_v59  ;;  %v7842_v51 = vsel %vm342_vm3, %v374_v18, %v376_v29 }
  0x94   : > { %6230 = vmatmul.mubr.msk.f32.vlgmr.msra.gmra.mrb[0].mxu0 %vm415_vm1, %v354_v48  ;;  %v7808_v48 = vsel %vm342_vm3, %v365_v41, %v367_v60 }
  0x95   : > { %6275 = vmatpush3.msk.msra.mxu0 %vm476_vm0, %v7667_v39  ;;  %6232 = vmatprep.mubr.msk.f32.mxu0 %vm415_vm1, %v356_v62  ;;  %v369_v39 = vrot.slane %v7454_v42, 1  ;;  %9501 = vst [vmem:[#allocation24_spill] sm:$0xff] %v7808_v48  ;;  %v372_v62 = vrot.slane %v7460_v44, 1 }
  0x96   : > { %6321 = vmatprep.subr.msk.mxu0 %vm476_vm0, %v7775_v61  ;;  %6056 = vmatprep.mubr.msk.f32.mxu1 %vm415_vm1, %v7808_v48 }
  0x97   : > { %v7821_v42 = vsel %vm342_vm3, %v367_v60, %v369_v39  ;;  %v7825_v63 = vsel %vm342_vm3, %v371_v8, %v372_v62  ;;  %v7837_v41 = vsel %vm342_vm3, %v372_v62, %v374_v18  ;;  %v378_v60 = vrot.slane %v7494_v56, 1 }
  0x98   : > { %6233 = vmatmul.mubr.msk.f32.gmra.mrb[2].mxu0 %vm415_vm1, %v7769_v12  ;;  %9502 = vst [vmem:[#allocation25_spill] sm:$0xff] %v7821_v42  ;;  %6057 = vmatmul.mubr.msk.f32.gmra.mrb[10].mxu1 %vm415_vm1, %v7821_v42  ;;  %9503 = vst [vmem:[#allocation26_spill] sm:$0xff] %v7837_v41  ;;  %v379_v39 = vrot.slane %v7497_v57, 1  ;;  %v381_v8 = vrot.slane %v7500_v58, 1  ;;  %v383_v18 = vrot.slane %v7516_v0, 1 }
  0x99   : > { %6235 = vmatprep.mubr.msk.f32.mxu0 %vm415_vm1, %v7785_v6  ;;  %6059 = vmatprep.mubr.msk.f32.mxu1 %vm415_vm1, %v7825_v63 }
  0x9a   : > { %v7854_v62 = vsel %vm342_vm3, %v378_v60, %v379_v39  ;;  %v7858_v29 = vsel %vm342_vm3, %v379_v39, %v381_v8  ;;  %v7871_v0 = vsel %vm342_vm3, %v381_v8, %v383_v18  ;;  %v388_v60 = vrot.slane %v7538_v15, 1 }
  0x9b   : > { %9504 = vst [vmem:[#allocation27_spill] sm:$0xff] %v7854_v62  ;;  %9505 = vst [vmem:[#allocation28_spill] sm:$0xff] %v7858_v29  ;;  %v393_v18 = vrot.slane %v7559_v31, 1 }
  0x9c   : > { %6236 = vmatmul.mubr.msk.f32.gmra.mrb[4].mxu0 %vm415_vm1, %v7792_v46  ;;  %6060 = vmatmul.mubr.msk.f32.gmra.mrb[12].mxu1 %vm415_vm1, %v7837_v41  ;;  %9506 = vst [vmem:[#allocation29_spill] sm:$0xff] %v7871_v0 }
  0x9d   : > { %6238 = vmatprep.mubr.msk.f32.mxu0 %vm415_vm1, %v7804_v59  ;;  %6062 = vmatprep.mubr.msk.f32.mxu1 %vm415_vm1, %v7842_v51 }
  0xa0   : > { %6239 = vmatmul.mubr.msk.f32.gmra.mrb[6].mxu0 %vm415_vm1, %v7808_v48  ;;  %v386_v48 = vrot.slane %v7522_v5, 1  ;;  %6063 = vmatmul.mubr.msk.f32.gmra.mrb[14].mxu1 %vm415_vm1, %v7854_v62 }
  0xa1   : > { %6241 = vmatprep.mubr.msk.f32.mxu0 %vm415_vm1, %v7821_v42  ;;  %v385_v42 = vrot.slane %v7519_v1, 1  ;;  %6065 = vmatprep.mubr.msk.f32.mxu1 %vm415_vm1, %v7858_v29 }
  0xa2   : > { %v7887_v8 = vsel %vm342_vm3, %v386_v48, %v388_v60 }
  0xa3   : > { %v7875_v39 = vsel %vm342_vm3, %v385_v42, %v386_v48  ;;  %9507 = vst [vmem:[#allocation30_spill] sm:$0xff] %v7887_v8  ;;  %v392_v42 = vrot.slane %v7556_v27, 1 }
  0xa4   : > { %6242 = vmatmul.mubr.msk.f32.gmra.mrb[8].mxu0 %vm415_vm1, %v7825_v63  ;;  %6066 = vmatmul.mubr.msk.f32.gmra.mrb[16].mxu1 %vm415_vm1, %v7871_v0 }
  0xa5   : > { %6244 = vmatprep.mubr.msk.f32.mxu0 %vm415_vm1, %v7837_v41  ;;  %v390_v41 = vrot.slane %v7541_v16, 1  ;;  %6068 = vmatprep.mubr.msk.f32.mxu1 %vm415_vm1, %v7875_v39  ;;  %v7904_v48 = vsel %vm342_vm3, %v392_v42, %v393_v18  ;;  %v402_v42 = vrot.slane %v7600_v14, 1 }
  0xa6   : > { %9508 = vst [vmem:[#allocation31_spill] sm:$0xff] %v7904_v48 }
  0xa7   : > { %v7892_v16 = vsel %vm342_vm3, %v388_v60, %v390_v41  ;;  %v397_v41 = vrot.slane %v7578_v49, 1 }
  0xa8   : > { %6245 = vmatmul.mubr.msk.f32.gmra.mrb[10].mxu0 %vm415_vm1, %v7842_v51  ;;  %6069 = vmatmul.mubr.msk.f32.gmra.mrb[18].mxu1 %vm415_vm1, %v7887_v8 }
  0xa9   : > { %6247 = vmatprep.mubr.msk.f32.mxu0 %vm415_vm1, %v7854_v62  ;;  %v395_v62 = vrot.slane %v7562_v33, 1  ;;  %6071 = vmatprep.mubr.msk.f32.mxu1 %vm415_vm1, %v7892_v16 }
  0xab   : > { %v7908_v60 = vsel %vm342_vm3, %v393_v18, %v395_v62  ;;  %v7921_v49 = vsel %vm342_vm3, %v395_v62, %v397_v41  ;;  %v407_v41 = vrot.slane %v7621_v24, 1 }
  0xac   : > { %6248 = vmatmul.mubr.msk.f32.gmra.mrb[12].mxu0 %vm415_vm1, %v7858_v29  ;;  %v400_v29 = vrot.slane %v7584_v55, 1  ;;  %6072 = vmatmul.mubr.msk.f32.gmra.mrb[20].mxu1 %vm415_vm1, %v7904_v48 }
  0xad   : > { %6250 = vmatprep.mubr.msk.f32.mxu0 %vm415_vm1, %v7871_v0  ;;  %v399_v0 = vrot.slane %v7581_v53, 1  ;;  %6074 = vmatprep.mubr.msk.f32.mxu1 %vm415_vm1, %v7908_v60 }
  0xae   : > { %v7937_v62 = vsel %vm342_vm3, %v400_v29, %v402_v42 }
  0xaf   : > { %v7925_v18 = vsel %vm342_vm3, %v399_v0, %v400_v29  ;;  %9510 = vst [vmem:[#allocation33_spill] sm:$0xff] %v7937_v62  ;;  %v406_v0 = vrot.slane %v7618_v38, 1 }
  0xb0   : > { %6251 = vmatmul.mubr.msk.f32.gmra.mrb[14].mxu0 %vm415_vm1, %v7875_v39  ;;  %9509 = vst [vmem:[#allocation32_spill] sm:$0xff] %v7925_v18  ;;  %6075 = vmatmul.mubr.msk.f32.gmra.mrb[22].mxu1 %vm415_vm1, %v7921_v49 }
  0xb1   : > { %6253 = vmatprep.mubr.msk.f32.mxu0 %vm415_vm1, %v7887_v8  ;;  %v404_v8 = vrot.slane %v7603_v19, 1  ;;  %6077 = vmatprep.mubr.msk.f32.mxu1 %vm415_vm1, %v7925_v18  ;;  %v7954_v29 = vsel %vm342_vm3, %v406_v0, %v407_v41 }
  0xb2   : > { %9512 = vst [vmem:[#allocation35_spill] sm:$0xff] %v7954_v29 }
  0xb3   : > { %v7942_v19 = vsel %vm342_vm3, %v402_v42, %v404_v8  ;;  %v411_v8 = vrot.slane %v7640_v10, 1  ;;  %v1617_v10 = vrot.slane %v7752_v22, 1 }
  0xb4   : > { %6254 = vmatmul.mubr.msk.f32.gmra.mrb[16].mxu0 %vm415_vm1, %v7892_v16  ;;  %9511 = vst [vmem:[#allocation34_spill] sm:$0xff] %v7942_v19  ;;  %6078 = vmatmul.mubr.msk.f32.gmra.mrb[24].mxu1 %vm415_vm1, %v7937_v62 }
  0xb5   : > { %6256 = vmatprep.mubr.msk.f32.mxu0 %vm415_vm1, %v7904_v48  ;;  %v409_v48 = vrot.slane %v7624_v17, 1  ;;  %6080 = vmatprep.mubr.msk.f32.mxu1 %vm415_vm1, %v7942_v19 }
  0xb7   : > { %v7958_v42 = vsel %vm342_vm3, %v407_v41, %v409_v48  ;;  %v7972_v0 = vsel %vm342_vm3, %v409_v48, %v411_v8  ;;  %v7975_v41 = vld [vmem:[%s7351_s9 + $0x158] sm:$0x3] }
  0xb8   : > { %6257 = vmatmul.mubr.msk.f32.gmra.mrb[18].mxu0 %vm415_vm1, %v7908_v60  ;;  %6081 = vmatmul.mubr.msk.f32.gmra.mrb[26].mxu1 %vm415_vm1, %v7954_v29  ;;  %v1619_v8 = vrot.slane %v7975_v41, 1 }
  0xb9   : > { %6259 = vmatprep.mubr.msk.f32.mxu0 %vm415_vm1, %v7921_v49  ;;  %6083 = vmatprep.mubr.msk.f32.mxu1 %vm415_vm1, %v7958_v42 }
  0xbc   : > { %6260 = vmatmul.mubr.msk.f32.gmra.mrb[20].mxu0 %vm415_vm1, %v7925_v18  ;;  %v1614_v18 = vrot.slane %v7732_v7, 1  ;;  %6084 = vmatmul.mubr.msk.f32.gmra.mrb[28].mxu1 %vm415_vm1, %v7972_v0 }
  0xbd   : > { %6262 = vmatprep.mubr.msk.f32.mxu0 %vm415_vm1, %v7937_v62  ;;  %v1615_v62 = vrot.slane %v7737_v26, 1  ;;  %6088 = vmatprep.mubr.msk.f32.mxu1 %vm415_vm1, %v7354_v2  ;;  %v8006_v2 = vsel %vm342_vm3, %v1617_v10, %v1619_v8  ;;  %v9525_v8 = vld [vmem:[#allocation19_spill] sm:$0xff] }
  0xbf   : > { %v7989_v48 = vsel %vm342_vm3, %v1614_v18, %v1615_v62  ;;  %v9521_v18 = vld [vmem:[#allocation15_spill] sm:$0xff] }
  0xc0   : > { %6263 = vmatmul.mubr.msk.f32.gmra.mrb[22].mxu0 %vm415_vm1, %v7942_v19  ;;  %v301_v19 = vld [vmem:[%s9416_s1] sm:$0xf] }
  0xc1   : > { %6265 = vmatprep.mubr.msk.f32.mxu0 %vm415_vm1, %v7954_v29  ;;  %6086 = vmatprep.subr.msk.mxu1 %vm476_vm0, %v301_v19  ;;  %v7994_v29 = vsel %vm342_vm3, %v1615_v62, %v1617_v10  ;;  %v9522_v62 = vld [vmem:[#allocation16_spill] sm:$0xff]  ;;  %v9524_v10 = vld [vmem:[#allocation18_spill] sm:$0xff] }
  0xc2   : > { %6087 = vmatpush3.msk.msra.mxu1 %vm476_vm0, %v301_v19  ;;  %v9523_v19 = vld [vmem:[#allocation17_spill] sm:$0xff] }
  0xc3   : > { %6089 = vmatmul.mubr.msk.f32.vlgmr.msra.gmra.mrb[0].mxu1 %vm415_vm1, %v7357_v3  ;;  %v8019_v3 = vld [vmem:[%s9416_s1 + $0x1c] sm:$0xf] }
  0xc4   : > { %6266 = vmatmul.mubr.msk.f32.gmra.mrb[24].mxu0 %vm415_vm1, %v7958_v42  ;;  %6091 = vmatprep.mubr.msk.f32.mxu1 %vm415_vm1, %v7360_v4  ;;  %v9513_v4 = vld [vmem:[#allocation7_spill] sm:$0xff] }
  0xc5   : > { %6268 = vmatprep.mubr.msk.f32.mxu0 %vm415_vm1, %v7972_v0 }
  0xc7   : > { %6092 = vmatmul.mubr.msk.f32.gmra.mrb[2].mxu1 %vm415_vm1, %v7369_v9  ;;  %v9514_v9 = vld [vmem:[#allocation8_spill] sm:$0xff] }
  0xc8   : > { %6269 = vmatmul.mubr.msk.f32.gmra.mrb[26].mxu0 %vm415_vm1, %v7989_v48  ;;  %6094 = vmatprep.mubr.msk.f32.mxu1 %vm415_vm1, %v7373_v11  ;;  %v9515_v11 = vld [vmem:[#allocation9_spill] sm:$0xff] }
  0xc9   : > { %6271 = vmatprep.mubr.msk.f32.mxu0 %vm415_vm1, %v7994_v29 }
  0xcb   : > { %6095 = vmatmul.mubr.msk.f32.gmra.mrb[4].mxu1 %vm415_vm1, %v7377_v13  ;;  %v9516_v13 = vld [vmem:[#allocation10_spill] sm:$0xff] }
  0xcc   : > { %6272 = vmatmul.mubr.msk.f32.gmra.mrb[28].mxu0 %vm415_vm1, %v8006_v2  ;;  %6097 = vmatprep.mubr.msk.f32.mxu1 %vm415_vm1, %v7389_v20 }
  0xcd   : > { %6276 = vmatprep.mubr.msk.f32.mxu0 %vm415_vm1, %v7403_v23  ;;  %v9517_v23 = vld [vmem:[#allocation11_spill] sm:$0xff] }
  0xcf   : > { %6098 = vmatmul.mubr.msk.f32.gmra.mrb[6].mxu1 %vm415_vm1, %v7392_v21 }
  0xd0   : > { %6277 = vmatmul.mubr.msk.f32.vlgmr.msra.gmra.mrb[0].mxu0 %vm415_vm1, %v7407_v25  ;;  %6100 = vmatprep.mubr.msk.f32.mxu1 %vm415_vm1, %v7412_v28  ;;  %v9518_v25 = vld [vmem:[#allocation12_spill] sm:$0xff] }
  0xd1   : > { %6322 = vmatpush3.msk.msra.mxu0 %vm476_vm0, %v7775_v61  ;;  %6279 = vmatprep.mubr.msk.f32.mxu0 %vm415_vm1, %v7424_v30  ;;  %v9519_v30 = vld [vmem:[#allocation13_spill] sm:$0xff]  ;;  %v9520_v61 = vld [vmem:[#allocation14_spill] sm:$0xff] }
  0xd2   : > { %6368 = vmatprep.subr.msk.mxu0 %vm476_vm0, %v8019_v3 }
  0xd3   : > { %6101 = vmatmul.mubr.msk.f32.gmra.mrb[8].mxu1 %vm415_vm1, %v7432_v34 }
  0xd4   : > { %6280 = vmatmul.mubr.msk.f32.gmra.mrb[2].mxu0 %vm415_vm1, %v7428_v32  ;;  %6103 = vmatprep.mubr.msk.f32.mxu1 %vm415_vm1, %v7435_v35 }
  0xd5   : > { %6282 = vmatprep.mubr.msk.f32.mxu0 %vm415_vm1, %v7445_v37 }
  0xd7   : > { %6104 = vmatmul.mubr.msk.f32.gmra.mrb[10].mxu1 %vm415_vm1, %v7438_v36 }
  0xd8   : > { %6283 = vmatmul.mubr.msk.f32.gmra.mrb[4].mxu0 %vm415_vm1, %v7450_v40  ;;  %6106 = vmatprep.mubr.msk.f32.mxu1 %vm415_vm1, %v7457_v43 }
  0xd9   : > { %6285 = vmatprep.mubr.msk.f32.mxu0 %vm415_vm1, %v7467_v45 }
  0xdb   : > { %6107 = vmatmul.mubr.msk.f32.gmra.mrb[12].mxu1 %vm415_vm1, %v7460_v44 }
  0xdc   : > { %6286 = vmatmul.mubr.msk.f32.gmra.mrb[6].mxu0 %vm415_vm1, %v7471_v47  ;;  %6109 = vmatprep.mubr.msk.f32.mxu1 %vm415_vm1, %v7476_v50 }
  0xdd   : > { %6288 = vmatprep.mubr.msk.f32.mxu0 %vm415_vm1, %v7486_v52 }
  0xdf   : > { %6110 = vmatmul.mubr.msk.f32.gmra.mrb[14].mxu1 %vm415_vm1, %v7494_v56 }
  0xe0   : > { %6289 = vmatmul.mubr.msk.f32.gmra.mrb[8].mxu0 %vm415_vm1, %v7490_v54  ;;  %6112 = vmatprep.mubr.msk.f32.mxu1 %vm415_vm1, %v7497_v57 }
  0xe1   : > { %6291 = vmatprep.mubr.msk.f32.mxu0 %vm415_vm1, %v9513_v4 }
  0xe3   : > { %6113 = vmatmul.mubr.msk.f32.gmra.mrb[16].mxu1 %vm415_vm1, %v7500_v58 }
  0xe4   : > { %6292 = vmatmul.mubr.msk.f32.gmra.mrb[10].mxu0 %vm415_vm1, %v9514_v9  ;;  %6115 = vmatprep.mubr.msk.f32.mxu1 %vm415_vm1, %v7519_v1 }
  0xe5   : > { %6294 = vmatprep.mubr.msk.f32.mxu0 %vm415_vm1, %v9515_v11 }
  0xe7   : > { %6116 = vmatmul.mubr.msk.f32.gmra.mrb[18].mxu1 %vm415_vm1, %v7522_v5 }
  0xe8   : > { %6295 = vmatmul.mubr.msk.f32.gmra.mrb[12].mxu0 %vm415_vm1, %v9516_v13  ;;  %6118 = vmatprep.mubr.msk.f32.mxu1 %vm415_vm1, %v7538_v15 }
  0xe9   : > { %6297 = vmatprep.mubr.msk.f32.mxu0 %vm415_vm1, %v9517_v23 }
  0xeb   : > { %6119 = vmatmul.mubr.msk.f32.gmra.mrb[20].mxu1 %vm415_vm1, %v7556_v27 }
  0xec   : > { %6298 = vmatmul.mubr.msk.f32.gmra.mrb[14].mxu0 %vm415_vm1, %v9518_v25  ;;  %6121 = vmatprep.mubr.msk.f32.mxu1 %vm415_vm1, %v7559_v31  ;;  %v1882_v25 = vrot.slane %v7975_v41, 2  ;;  %v5336_v41 = vld [vmem:[%s9416_s1 + $0x20] sm:$0xf] }
  0xed   : > { %6300 = vmatprep.mubr.msk.f32.mxu0 %vm415_vm1, %v9519_v30  ;;  %v9529_v30 = vld [vmem:[#allocation23_spill] sm:$0xff] }
  0xef   : > { %6122 = vmatmul.mubr.msk.f32.gmra.mrb[22].mxu1 %vm415_vm1, %v7562_v33 }
  0xf0   : > { %6301 = vmatmul.mubr.msk.f32.gmra.mrb[16].mxu0 %vm415_vm1, %v9520_v61  ;;  %6124 = vmatprep.mubr.msk.f32.mxu1 %vm415_vm1, %v7581_v53  ;;  %v1880_v61 = vrot.slane %v7752_v22, 2 }
  0xf1   : > { %6303 = vmatprep.mubr.msk.f32.mxu0 %vm415_vm1, %v9521_v18  ;;  %v1878_v18 = vrot.slane %v7737_v26, 2 }
  0xf3   : > { %6125 = vmatmul.mubr.msk.f32.gmra.mrb[24].mxu1 %vm415_vm1, %v7584_v55  ;;  %v8135_v23 = vsel %vm973_vm2, %v1878_v18, %v1880_v61 }
  0xf4   : > { %6304 = vmatmul.mubr.msk.f32.gmra.mrb[18].mxu0 %vm415_vm1, %v9522_v62  ;;  %6127 = vmatprep.mubr.msk.f32.mxu1 %vm415_vm1, %v7600_v14  ;;  %v9526_v62 = vld [vmem:[#allocation20_spill] sm:$0xff] }
  0xf5   : > { %6306 = vmatprep.mubr.msk.f32.mxu0 %vm415_vm1, %v9523_v19  ;;  %v1877_v19 = vrot.slane %v7732_v7, 2 }
  0xf7   : > { %6128 = vmatmul.mubr.msk.f32.gmra.mrb[26].mxu1 %vm415_vm1, %v7618_v38 }
  0xf8   : > { %6307 = vmatmul.mubr.msk.f32.gmra.mrb[20].mxu0 %vm415_vm1, %v9524_v10  ;;  %6130 = vmatprep.mubr.msk.f32.mxu1 %vm415_vm1, %v7621_v24  ;;  %v9527_v10 = vld [vmem:[#allocation21_spill] sm:$0xff] }
  0xf9   : > { %6309 = vmatprep.mubr.msk.f32.mxu0 %vm415_vm1, %v9525_v8  ;;  %v9528_v8 = vld [vmem:[#allocation22_spill] sm:$0xff] }
  0xfb   : > { %6131 = vmatmul.mubr.msk.f32.gmra.mrb[28].mxu1 %vm415_vm1, %v7624_v17 }
  0xfc   : > { %6310 = vmatmul.mubr.msk.f32.gmra.mrb[22].mxu0 %vm415_vm1, %v9526_v62  ;;  %v8131_v62 = vsel %vm973_vm2, %v1877_v19, %v1878_v18  ;;  %v9552_v19 = vld [vmem:[#allocation21_spill] sm:$0xff] }
  0xfd   : > { %6312 = vmatprep.mubr.msk.f32.mxu0 %vm415_vm1, %v9527_v10  ;;  %v8142_v10 = vsel %vm973_vm2, %v1880_v61, %v1882_v25  ;;  %v9551_v25 = vld [vmem:[#allocation20_spill] sm:$0xff] }
 0x100   : > { %6313 = vmatmul.mubr.msk.f32.gmra.mrb[24].mxu0 %vm415_vm1, %v9528_v8 }
 0x101   : > { %6315 = vmatprep.mubr.msk.f32.mxu0 %vm415_vm1, %v9529_v30 }
 0x104   : > { %6316 = vmatmul.mubr.msk.f32.gmra.mrb[26].mxu0 %vm415_vm1, %v8131_v62 }
 0x105   : > { %6318 = vmatprep.mubr.msk.f32.mxu0 %vm415_vm1, %v8135_v23 }
 0x108   : > { %6319 = vmatmul.mubr.msk.f32.gmra.mrb[28].mxu0 %vm415_vm1, %v8142_v10 }
 0x109   : > { %6323 = vmatprep.mubr.msk.f32.mxu0 %vm415_vm1, %v7389_v20  ;;  %v5400_v20 = vld [vmem:[%s9418_s3 + $0x20] sm:$0xff] }
 0x10c   : > { %6324 = vmatmul.mubr.msk.f32.vlgmr.msra.gmra.mrb[0].mxu0 %vm415_vm1, %v7392_v21  ;;  %v5401_v21 = vld [vmem:[%s9418_s3 + $0x28] sm:$0xff] }
 0x10d   : > { %6369 = vmatpush3.msk.msra.mxu0 %vm476_vm0, %v8019_v3  ;;  %6326 = vmatprep.mubr.msk.f32.mxu0 %vm415_vm1, %v7412_v28  ;;  %v8213_v28 = vld [vmem:[%s7351_s9 + $0x160] sm:$0xff] }
 0x10e   : > { %6415 = vmatprep.subr.msk.mxu0 %vm476_vm0, %v5336_v41 }
 0x110   : > { %6327 = vmatmul.mubr.msk.f32.gmra.mrb[2].mxu0 %vm415_vm1, %v7432_v34  ;;  %v6750_v34 = vpack.c.bf16 %v5401_v21, %v5400_v20  ;;  %v2663_v21 = vrot.slane %v8213_v28, 2 }
 0x111   : > { %6329 = vmatprep.mubr.msk.f32.mxu0 %vm415_vm1, %v7435_v35  ;;  %v8216_v35 = vld [vmem:[%s7351_s9 + $0x168] sm:$0xff] }
 0x112   : > { %6751 = vmatprep.subr.bf16.mxu1 %v6750_v34 }
 0x113   : > { %6753 = vmatpush3.bf16.msra.mxu1 %v6750_v34  ;;  %v2664_v34 = vrot.slane %v8216_v35, 2 }
 0x114   : > { %6330 = vmatmul.mubr.msk.f32.gmra.mrb[4].mxu0 %vm415_vm1, %v7438_v36  ;;  %v8223_v36 = vld [vmem:[%s7351_s9 + $0x170] sm:$0xff] }
 0x115   : > { %6332 = vmatprep.mubr.msk.f32.mxu0 %vm415_vm1, %v7457_v43  ;;  %v9530_v43 = vld [vmem:[#allocation24_spill] sm:$0xff] }
 0x118   : > { %6333 = vmatmul.mubr.msk.f32.gmra.mrb[6].mxu0 %vm415_vm1, %v7460_v44  ;;  %v9531_v44 = vld [vmem:[#allocation25_spill] sm:$0xff] }
 0x119   : > { %6335 = vmatprep.mubr.msk.f32.mxu0 %vm415_vm1, %v7476_v50  ;;  %v5402_v50 = vld [vmem:[%s9418_s3 + $0x30] sm:$0xff] }
 0x11c   : > { %6336 = vmatmul.mubr.msk.f32.gmra.mrb[8].mxu0 %vm415_vm1, %v7494_v56  ;;  %v5403_v56 = vld [vmem:[%s9418_s3 + $0x38] sm:$0xff] }
 0x11d   : > { %6338 = vmatprep.mubr.msk.f32.mxu0 %vm415_vm1, %v7497_v57  ;;  %v9532_v57 = vld [vmem:[#allocation26_spill] sm:$0xff] }
 0x120   : > { %6339 = vmatmul.mubr.msk.f32.gmra.mrb[10].mxu0 %vm415_vm1, %v7500_v58  ;;  %v6754_v58 = vpack.c.bf16 %v5403_v56, %v5402_v50 }
 0x121   : > { %6341 = vmatprep.mubr.msk.f32.mxu0 %vm415_vm1, %v7519_v1  ;;  %v9533_v1 = vld [vmem:[#allocation27_spill] sm:$0xff] }
 0x122   : > { %6755 = vmatprep.subr.bf16.mxu1 %v6754_v58 }
 0x123   : > { %6757 = vmatpush3.bf16.msra.mxu1 %v6754_v58 }
 0x124   : > { %6342 = vmatmul.mubr.msk.f32.gmra.mrb[12].mxu0 %vm415_vm1, %v7522_v5  ;;  %v9534_v5 = vld [vmem:[#allocation28_spill] sm:$0xff] }
 0x125   : > { %6344 = vmatprep.mubr.msk.f32.mxu0 %vm415_vm1, %v7538_v15  ;;  %v9535_v15 = vld [vmem:[#allocation29_spill] sm:$0xff] }
 0x128   : > { %6345 = vmatmul.mubr.msk.f32.gmra.mrb[14].mxu0 %vm415_vm1, %v7556_v27  ;;  %v9538_v27 = vld [vmem:[#allocation32_spill] sm:$0xff] }
 0x129   : > { %6347 = vmatprep.mubr.msk.f32.mxu0 %vm415_vm1, %v7559_v31  ;;  %v9539_v31 = vld [vmem:[#allocation33_spill] sm:$0xff] }
 0x12c   : > { %6348 = vmatmul.mubr.msk.f32.gmra.mrb[16].mxu0 %vm415_vm1, %v7562_v33  ;;  %v9540_v33 = vld [vmem:[#allocation34_spill] sm:$0xff] }
 0x12d   : > { %6350 = vmatprep.mubr.msk.f32.mxu0 %vm415_vm1, %v7581_v53  ;;  %v2400_v53 = vrot.slane %v8213_v28, 1 }
 0x130   : > { %6351 = vmatmul.mubr.msk.f32.gmra.mrb[18].mxu0 %vm415_vm1, %v7584_v55  ;;  %v2401_v55 = vrot.slane %v8216_v35, 1 }
 0x131   : > { %6353 = vmatprep.mubr.msk.f32.mxu0 %vm415_vm1, %v7600_v14  ;;  %v2403_v14 = vrot.slane %v8223_v36, 1 }
 0x134   : > { %6354 = vmatmul.mubr.msk.f32.gmra.mrb[20].mxu0 %vm415_vm1, %v7618_v38  ;;  %v9541_v38 = vld [vmem:[#allocation35_spill] sm:$0xff] }
 0x135   : > { %6356 = vmatprep.mubr.msk.f32.mxu0 %vm415_vm1, %v7621_v24  ;;  %v9537_v24 = vld [vmem:[#allocation31_spill] sm:$0xff] }
 0x138   : > { %6357 = vmatmul.mubr.msk.f32.gmra.mrb[22].mxu0 %vm415_vm1, %v7624_v17  ;;  %v9536_v17 = vld [vmem:[#allocation30_spill] sm:$0xff] }
 0x139   : > { %6359 = vmatprep.mubr.msk.f32.mxu0 %vm415_vm1, %v7732_v7  ;;  %v2402_v7 = vsel %vm342_vm3, %v2400_v53, %v2401_v55 }
 0x13c   : > { %6360 = vmatmul.mubr.msk.f32.gmra.mrb[24].mxu0 %vm415_vm1, %v7737_v26  ;;  %v8288_v26 = vld [vmem:[%s7351_s9 + $0x178] sm:$0x3]  ;;  %s5078_s9 = sshll.u32 %s246_s12, 3 }
 0x13d   : > { %6362 = vmatprep.mubr.msk.f32.mxu0 %vm415_vm1, %v7752_v22  ;;  %v2405_v22 = vrot.slane %v8288_v26, 1  ;;  %s9350_s17 = scalar_lea.vmem %s9420_s5, %s5078_s9 }
 0x140   : > { %6363 = vmatmul.mubr.msk.f32.gmra.mrb[26].mxu0 %vm415_vm1, %v8213_v28  ;;  %v2668_v28 = vrot.slane %v8288_v26, 2 }
 0x141   : > { %6365 = vmatprep.mubr.msk.f32.mxu0 %vm415_vm1, %v8216_v35 }
 0x144   : > { %6366 = vmatmul.mubr.msk.f32.gmra.mrb[28].mxu0 %vm415_vm1, %v8223_v36 }
 0x145   : > { %6370 = vmatprep.mubr.msk.f32.mxu0 %vm415_vm1, %v7769_v12  ;;  %v2404_v12 = vsel %vm342_vm3, %v2401_v55, %v2403_v14  ;;  %v3194_v55 = vld [vmem:[%s9418_s3] sm:$0xff] }
 0x148   : > { %6371 = vmatmul.mubr.msk.f32.vlgmr.msra.gmra.mrb[0].mxu0 %vm415_vm1, %v7785_v6  ;;  %v2406_v6 = vsel %vm342_vm3, %v2403_v14, %v2405_v22  ;;  %v3195_v14 = vld [vmem:[%s9418_s3 + $0x8] sm:$0xff]  ;;  %v8438_v22 = vstv %s5369_s26 }
 0x149   : > { %6416 = vmatpush3.msk.msra.mxu0 %vm476_vm0, %v5336_v41  ;;  %6373 = vmatprep.mubr.msk.f32.mxu0 %vm415_vm1, %v7792_v46  ;;  %v9543_v46 = vld [vmem:[#allocation12_spill] sm:$0xff]  ;;  %v8431_v26 = vpack.c.bf16 %v3195_v14, %v3194_v55  ;;  %vm3008_vm0 = vcmp.ge.s32.totalorder %v8438_v22, 0  ;;  %v8485_v14 = vld [vmem:[%s9417_s2] ss:$0 sm:$0xff] }
 0x14b   : > { %6759 = vmatprep.subr.bf16.mxu1 %v8431_v26 }
 0x14c   : > { %6374 = vmatmul.mubr.msk.f32.gmra.mrb[2].mxu0 %vm415_vm1, %v7804_v59 }
 0x14d   : > { %6376 = vmatprep.mubr.msk.f32.mxu0 %vm415_vm1, %v9530_v43  ;;  %v2666_v43 = vrot.slane %v8223_v36, 2 }
 0x14f   : > { %v2667_v35 = vsel %vm973_vm2, %v2664_v34, %v2666_v43  ;;  %v2669_v36 = vsel %vm973_vm2, %v2666_v43, %v2668_v28 }
 0x150   : > { %6377 = vmatmul.mubr.msk.f32.gmra.mrb[4].mxu0 %vm415_vm1, %v9531_v44 }
 0x151   : > { %6379 = vmatprep.mubr.msk.f32.mxu0 %vm415_vm1, %v7825_v63  ;;  %v9544_v63 = vld [vmem:[#allocation13_spill] sm:$0xff] }
 0x154   : > { %6380 = vmatmul.mubr.msk.f32.gmra.mrb[6].mxu0 %vm415_vm1, %v9532_v57 }
 0x155   : > { %6382 = vmatprep.mubr.msk.f32.mxu0 %vm415_vm1, %v7842_v51  ;;  %v9545_v51 = vld [vmem:[#allocation14_spill] sm:$0xff] }
 0x158   : > { %6383 = vmatmul.mubr.msk.f32.gmra.mrb[8].mxu0 %vm415_vm1, %v9533_v1 }
 0x159   : > { %6385 = vmatprep.mubr.msk.f32.mxu0 %vm415_vm1, %v9534_v5 }
 0x15c   : > { %6386 = vmatmul.mubr.msk.f32.gmra.mrb[10].mxu0 %vm415_vm1, %v9535_v15 }
 0x15d   : > { %6388 = vmatprep.mubr.msk.f32.mxu0 %vm415_vm1, %v7875_v39 }
 0x160   : > { %6389 = vmatmul.mubr.msk.f32.gmra.mrb[12].mxu0 %vm415_vm1, %v9536_v17 }
 0x161   : > { %6391 = vmatprep.mubr.msk.f32.mxu0 %vm415_vm1, %v7892_v16 }
 0x164   : > { %6392 = vmatmul.mubr.msk.f32.gmra.mrb[14].mxu0 %vm415_vm1, %v9537_v24 }
 0x165   : > { %6394 = vmatprep.mubr.msk.f32.mxu0 %vm415_vm1, %v7908_v60  ;;  %v9546_v60 = vld [vmem:[#allocation15_spill] sm:$0xff] }
 0x168   : > { %6395 = vmatmul.mubr.msk.f32.gmra.mrb[16].mxu0 %vm415_vm1, %v7921_v49  ;;  %v9547_v49 = vld [vmem:[#allocation16_spill] sm:$0xff] }
 0x169   : > { %6397 = vmatprep.mubr.msk.f32.mxu0 %vm415_vm1, %v9538_v27 }
 0x16c   : > { %6398 = vmatmul.mubr.msk.f32.gmra.mrb[18].mxu0 %vm415_vm1, %v9539_v31 }
 0x16d   : > { %6400 = vmatprep.mubr.msk.f32.mxu0 %vm415_vm1, %v9540_v33 }
 0x170   : > { %6401 = vmatmul.mubr.msk.f32.gmra.mrb[20].mxu0 %vm415_vm1, %v9541_v38 }
 0x171   : > { %6403 = vmatprep.mubr.msk.f32.mxu0 %vm415_vm1, %v7958_v42 }
 0x174   : > { %6404 = vmatmul.mubr.msk.f32.gmra.mrb[22].mxu0 %vm415_vm1, %v7972_v0  ;;  %v9548_v0 = vld [vmem:[#allocation17_spill] sm:$0xff] }
 0x175   : > { %6406 = vmatprep.mubr.msk.f32.mxu0 %vm415_vm1, %v7989_v48  ;;  %v9549_v48 = vld [vmem:[#allocation18_spill] sm:$0xff] }
 0x178   : > { %6407 = vmatmul.mubr.msk.f32.gmra.mrb[24].mxu0 %vm415_vm1, %v7994_v29 }
 0x179   : > { %6409 = vmatprep.mubr.msk.f32.mxu0 %vm415_vm1, %v8006_v2 }
 0x17c   : > { %6410 = vmatmul.mubr.msk.f32.gmra.mrb[26].mxu0 %vm415_vm1, %v2402_v7  ;;  %v3004_v7 = vlaneseq }
 0x17d   : > { %6412 = vmatprep.mubr.msk.f32.mxu0 %vm415_vm1, %v2404_v12 }
 0x17e   : > { %v8440_v12 = vshrl.u32 %v3004_v7, 7 }
 0x180   : > { %6413 = vmatmul.mubr.msk.f32.gmra.mrb[28].mxu0 %vm415_vm1, %v2406_v6  ;;  %v3002_v6 = vadd.s32 8, %v8438_v22  ;;  %vm3038_vm6 = vcmp.ge.s32.totalorder %v8440_v12, 1 }
 0x181   : > { %6417 = vmatprep.mubr.msk.f32.mxu0 %vm415_vm1, %v7428_v32 }
 0x182   : > { %vm3016_vm4 = vcmp.ge.s32.totalorder %v3002_v6, 0  ;;  %vm3026_vm5 = vcmp.lt.s32.totalorder %v3002_v6, 16 }
 0x183   : > { %vm3036_vm7 = vmand %vm3016_vm4, %vm3026_vm5  ;;  %vm3018_vm4 = vcmp.lt.s32.totalorder %v8438_v22, 16 }
 0x184   : > { %6418 = vmatmul.mubr.msk.f32.vlgmr.msra.gmra.mrb[0].mxu0 %vm415_vm1, %v7445_v37  ;;  %vm3065_vm8 = vmand %vm3036_vm7, %vm3038_vm6 }
 0x185   : > { %6420 = vmatprep.mubr.msk.f32.mxu0 %vm415_vm1, %v7450_v40  ;;  %v9542_v40 = vld [vmem:[#allocation11_spill] sm:$0xff] }
 0x188   : > { %6421 = vmatmul.mubr.msk.f32.gmra.mrb[2].mxu0 %vm415_vm1, %v7467_v45 }
 0x189   : > { %6423 = vmatprep.mubr.msk.f32.mxu0 %vm415_vm1, %v7471_v47 }
 0x18c   : > { %6424 = vmatmul.mubr.msk.f32.gmra.mrb[4].mxu0 %vm415_vm1, %v7486_v52 }
 0x18d   : > { %6426 = vmatprep.mubr.msk.f32.mxu0 %vm415_vm1, %v7490_v54 }
 0x190   : > { %6427 = vmatmul.mubr.msk.f32.gmra.mrb[6].mxu0 %vm415_vm1, %v9513_v4 }
 0x191   : > { %6429 = vmatprep.mubr.msk.f32.mxu0 %vm415_vm1, %v9514_v9  ;;  %v9550_v9 = vld [vmem:[#allocation19_spill] sm:$0xff] }
 0x194   : > { %6430 = vmatmul.mubr.msk.f32.gmra.mrb[8].mxu0 %vm415_vm1, %v9515_v11 }
 0x195   : > { %6432 = vmatprep.mubr.msk.f32.mxu0 %vm415_vm1, %v9516_v13 }
 0x196   : > { %v8327_v52 = vpop.f32.mrb[0].mxu1 }
 0x197   : > { %v8329_v59 = vpop.f32.mrb[1].mxu1 }
 0x198   : > { %6433 = vmatmul.mubr.msk.f32.gmra.mrb[10].mxu0 %vm415_vm1, %v9542_v40  ;;  %v8445_v40 = vadd.s32 16, %v8440_v12 }
 0x199   : > { %6435 = vmatprep.mubr.msk.f32.mxu0 %vm415_vm1, %v9543_v46 }
 0x19a   : > { %v8335_v39 = vpop.f32.mrb[2].mxu1  ;;  %vm3073_vm12 = vcmp.lt.s32.totalorder %v8445_v40, 17 }
 0x19b   : > { %v8337_v16 = vpop.f32.mrb[3].mxu1  ;;  %vm3100_vm14 = vmand %vm3036_vm7, %vm3073_vm12 }
 0x19c   : > { %6436 = vmatmul.mubr.msk.f32.gmra.mrb[12].mxu0 %vm415_vm1, %v9544_v63 }
 0x19d   : > { %6438 = vmatprep.mubr.msk.f32.mxu0 %vm415_vm1, %v9545_v51  ;;  %v3003_v51 = vadd.s32 9, %v8438_v22 }
 0x19e   : > { %v8343_v29 = vpop.f32.mrb[4].mxu1 }
 0x19f   : > { %v8345_v42 = vpop.f32.mrb[5].mxu1  ;;  %vm3017_vm9 = vcmp.ge.s32.totalorder %v3003_v51, 0  ;;  %vm3027_vm10 = vcmp.lt.s32.totalorder %v3003_v51, 16  ;;  %v2996_v51 = vadd.s32 2, %v8438_v22 }
 0x1a0   : > { %6439 = vmatmul.mubr.msk.f32.gmra.mrb[14].mxu0 %vm415_vm1, %v9546_v60  ;;  %vm3037_vm11 = vmand %vm3017_vm9, %vm3027_vm10 }
 0x1a1   : > { %6441 = vmatprep.mubr.msk.f32.mxu0 %vm415_vm1, %v9547_v49  ;;  %vm3068_vm13 = vmand %vm3037_vm11, %vm3038_vm6 }
 0x1a2   : > { %v8351_v2 = vpop.f32.mrb[6].mxu1  ;;  %vm3103_vm15 = vmand %vm3037_vm11, %vm3073_vm12 }
 0x1a3   : > { %v8353_v3 = vpop.f32.mrb[7].mxu1 }
 0x1a4   : > { %6442 = vmatmul.mubr.msk.f32.gmra.mrb[16].mxu0 %vm415_vm1, %v9548_v0  ;;  %v9467_v0 = vmov 0.0  }
 0x1a5   : > { %6444 = vmatprep.mubr.msk.f32.mxu0 %vm415_vm1, %v9549_v48  ;;  %v8465_v43 = vsel %vm3100_vm14, 1.0, %v9467_v0  ;;  %v8473_v28 = vsel %vm3037_vm11, 1.0, %v9467_v0 }
 0x1a6   : > { %v8359_v61 = vpop.f32.mrb[8].mxu1  ;;  %9554 = vst [vmem:[#allocation23_spill] sm:$0xff] %v8473_v28 }
 0x1a7   : > { %v8361_v18 = vpop.f32.mrb[9].mxu1 }
 0x1a8   : > { %6445 = vmatmul.mubr.msk.f32.gmra.mrb[18].mxu0 %vm415_vm1, %v9550_v9 }
 0x1a9   : > { %6447 = vmatprep.mubr.msk.f32.mxu0 %vm415_vm1, %v9551_v25  ;;  %v8449_v25 = vsel %vm3036_vm7, 1.0, %v9467_v0 }
 0x1aa   : > { %v8367_v41 = vpop.f32.mrb[10].mxu1 }
 0x1ab   : > { %v8369_v20 = vpop.f32.mrb[11].mxu1 }
 0x1ac   : > { %6448 = vmatmul.mubr.msk.f32.gmra.mrb[20].mxu0 %vm415_vm1, %v9552_v19  ;;  %v9557_v19 = vmov 0.0  }
 0x1ad   : > { %6450 = vmatprep.mubr.msk.f32.mxu0 %vm415_vm1, %v9528_v8 }
 0x1ae   : > { %v8378_v44 = vpop.f32.mrb[12].mxu1 }
 0x1af   : > { %v8380_v50 = vpop.f32.mrb[13].mxu1 }
 0x1b0   : > { %6451 = vmatmul.mubr.msk.f32.gmra.mrb[22].mxu0 %vm415_vm1, %v9529_v30  ;;  %v2665_v30 = vsel %vm973_vm2, %v2663_v21, %v2664_v34  ;;  %v8454_v21 = vsel %vm3065_vm8, 1.0, %v9467_v0  ;;  %v8460_v34 = vsel %vm3068_vm13, 1.0, %v9467_v0  ;;  %vm3028_vm8 = vmand %vm3008_vm0, %vm3018_vm4  ;;  %vm3020_vm0 = vcmp.lt.s32.totalorder %v2996_v51, 16 }
 0x1b1   : > { %6453 = vmatprep.mubr.msk.f32.mxu0 %vm415_vm1, %v8131_v62  ;;  %vm3041_vm10 = vmand %vm3028_vm8, %vm3038_vm6  ;;  %vm3267_vm4 = vcmask 261120  }
 0x1b2   : > { %v8389_v56 = vpop.f32.mrb[14].mxu1  ;;  %vm3076_vm13 = vmand %vm3028_vm8, %vm3073_vm12  ;;  %v5370_v8 = vsel %vm3041_vm10, 1.0, %v9557_v19 }
 0x1b3   : > { %v8391_v62 = vpop.f32.mrb[15].mxu1 }
 0x1b4   : > { %6454 = vmatmul.mubr.msk.f32.gmra.mrb[24].mxu0 %vm415_vm1, %v8135_v23 }
 0x1b5   : > { %6456 = vmatprep.mubr.msk.f32.mxu0 %vm415_vm1, %v8142_v10 }
 0x1b6   : > { %v8396_v23 = vpop.f32.mrb[16].mxu1 }
 0x1b7   : > { %v8398_v57 = vpop.f32.mrb[17].mxu1 }
 0x1b8   : > { %6457 = vmatmul.mubr.msk.f32.gmra.mrb[26].mxu0 %vm415_vm1, %v2665_v30  ;;  %v8470_v30 = vsel %vm3103_vm15, 1.0, %v9467_v0  ;;  %vm3010_vm15 = vcmp.ge.s32.totalorder %v2996_v51, 0 }
 0x1b9   : > { %6459 = vmatprep.mubr.msk.f32.mxu0 %vm415_vm1, %v2667_v35  ;;  %9553 = vst [vmem:[#allocation8_spill] sm:$0xff] %v8470_v30  ;;  %v2995_v35 = vadd.s32 1, %v8438_v22 }
 0x1ba   : > { %v8401_v10 = vpop.f32.mrb[18].mxu1 }
 0x1bb   : > { %v8403_v58 = vpop.f32.mrb[19].mxu1  ;;  %vm3009_vm5 = vcmp.ge.s32.totalorder %v2995_v35, 0  ;;  %vm3019_vm7 = vcmp.lt.s32.totalorder %v2995_v35, 16 }
 0x1bc   : > { %6460 = vmatmul.mubr.msk.f32.gmra.mrb[28].mxu0 %vm415_vm1, %v2669_v36  ;;  %vm8478_vm9 = vmand %vm3009_vm5, %vm3019_vm7 }
 0x1bd   : > { %vm3044_vm11 = vmand %vm8478_vm9, %vm3038_vm6 }
 0x1be   : > { %v8405_v1 = vpop.f32.mrb[20].mxu1  ;;  %vm3079_vm14 = vmand %vm8478_vm9, %vm3073_vm12  ;;  %v5373_v60 = vsel %vm3044_vm11, 1.0, %v9557_v19 }
 0x1bf   : > { %v8407_v5 = vpop.f32.mrb[21].mxu1  ;;  %vm8522_vm5 = vmand %vm3010_vm15, %vm3020_vm0 }
 0x1c2   : > { %v8409_v15 = vpop.f32.mrb[22].mxu1 }
 0x1c3   : > { %v8411_v17 = vpop.f32.mrb[23].mxu1 }
 0x1c6   : > { %v8413_v24 = vpop.f32.mrb[24].mxu1 }
 0x1c7   : > { %v8415_v27 = vpop.f32.mrb[25].mxu1 }
 0x1ca   : > { %v8417_v31 = vpop.f32.mrb[26].mxu1 }
 0x1cb   : > { %v8419_v33 = vpop.f32.mrb[27].mxu1 }
 0x1ce   : > { %v8421_v38 = vpop.f32.mrb[28].mxu1 }
 0x1cf   : > { %v8423_v53 = vpop.f32.mrb[29].mxu1 }
 0x257   : > { %v6419_v55 = vpop.f32.mrb[0].mxu0 }
 0x258   : > { %v6822_v7 = vadd.f32 %v6419_v55, %v8327_v52  ;;  %v2747_v6 = vpop.f32.mrb[1].mxu0  ;;  %v5371_v52 = vsel %vm3028_vm8, 1.0, %v9557_v19 }
 0x259   : > { %v6823_v35 = vadd.f32 %v2747_v6, %v8329_v59 }
 0x25a   : > { %v2934_v0 = vadd.f32 %v6822_v7, %v8485_v14 }
 0x25b   : > { %v2933_v55 = vadd.f32 %v6823_v35, %v8485_v14  ;;  %v6422_v48 = vpop.f32.mrb[2].mxu0  ;;  %v5372_v35 = vsel %vm3076_vm13, 1.0, %v9557_v19  ;;  %vm8594_vm13 = vmand %vm8522_vm5, %vm3073_vm12 }
 0x25c   : > { %v2964_v9 = vmax.f32 %v2934_v0, 0.0  ;;  %v6824_v59 = vadd.f32 %v6422_v48, %v8335_v39  ;;  %v2757_v6 = vpop.f32.mrb[3].mxu0  ;;  %v2997_v39 = vadd.s32 3, %v8438_v22 }
 0x25d   : > { %v2963_v7 = vmax.f32 %v2933_v55, 0.0  ;;  %v6825_v49 = vadd.f32 %v2757_v6, %v8337_v16  ;;  %v5375_v55 = vsel %vm3079_vm14, 1.0, %v9557_v19  ;;  %v5374_v16 = vsel %vm8478_vm9, 1.0, %v9557_v19  ;;  %vm8541_vm9 = vmand %vm8522_vm5, %vm3038_vm6 }
 0x25e   : > { %v8510_v46 = vmul.f32 %v5371_v52, %v2964_v9  ;;  %v2936_v0 = vadd.f32 %v6824_v59, %v8485_v14  ;;  %vm3011_vm7 = vcmp.ge.s32.totalorder %v2997_v39, 0  ;;  %vm3021_vm8 = vcmp.lt.s32.totalorder %v2997_v39, 16 }
 0x25f   : > { %v8514_v48 = vmul.f32 %v5370_v8, %v2963_v7  ;;  %v2935_v63 = vadd.f32 %v6825_v49, %v8485_v14  ;;  %v6425_v11 = vpop.f32.mrb[4].mxu0  ;;  %vm8572_vm10 = vmand %vm3011_vm7, %vm3021_vm8 }
 0x260   : > { %9558 = vst [vmem:[#allocation24_spill] sm:$0xff] %v8510_v46  ;;  %v2966_v52 = vmax.f32 %v2936_v0, 0.0  ;;  %v6826_v59 = vadd.f32 %v6425_v11, %v8343_v29  ;;  %v2767_v6 = vpop.f32.mrb[5].mxu0  ;;  %v3223_v8 = vrot.slane %v8510_v46, 1  ;;  %v3623_v49 = vrot.slane %v8510_v46, 2  ;;  %vm8608_vm14 = vmand %vm8572_vm10, %vm3038_vm6 }
 0x261   : > { %v2965_v7 = vmax.f32 %v2935_v63, 0.0  ;;  %v6827_v13 = vadd.f32 %v2767_v6, %v8345_v42  ;;  %v3222_v54 = vrot.slane %v8514_v48, 1  ;;  %v3622_v36 = vrot.slane %v8514_v48, 2  ;;  %vm8621_vm0 = vmand %vm8572_vm10, %vm3073_vm12 }
 0x262   : > { %v2938_v51 = vadd.f32 %v6826_v59, %v8485_v14  ;;  %v5377_v0 = vsel %vm8522_vm5, 1.0, %v9557_v19  ;;  %v3196_v59 = vld [vmem:[%s9418_s3 + $0x10] sm:$0xff]  ;;  %v8555_v6 = vmul.f32 %v5373_v60, %v2966_v52  ;;  %v5376_v60 = vsel %vm8541_vm9, 1.0, %v9557_v19 }
 0x263   : > { %v3166_v11 = vmul.f32 %v5372_v35, %v2965_v7  ;;  %v2937_v29 = vadd.f32 %v6827_v13, %v8485_v14  ;;  %v6428_v4 = vpop.f32.mrb[6].mxu0  ;;  %v3224_v42 = vsel %vm342_vm3, %v3222_v54, %v3223_v8  ;;  %v3197_v35 = vld [vmem:[%s9418_s3 + $0x18] sm:$0xff]  ;;  %v8553_v13 = vsel %vm973_vm2, %v3622_v36, %v3623_v49 }
 0x264   : > { %v2968_v7 = vmax.f32 %v2938_v51, 0.0  ;;  %v6828_v45 = vadd.f32 %v6428_v4, %v8351_v2  ;;  %v2777_v47 = vpop.f32.mrb[7].mxu0  ;;  %6470 = vmatprep.mubr.msk.f32.mxu1 %vm3267_vm4, %v3224_v42  ;;  %v2998_v54 = vadd.s32 4, %v8438_v22  ;;  %v6762_v52 = vpack.c.bf16 %v3197_v35, %v3196_v59 }
 0x265   : > { %v3225_v32 = vrot.slane %v3166_v11, 1  ;;  %v3625_v37 = vrot.slane %v3166_v11, 2  ;;  %v2967_v28 = vmax.f32 %v2937_v29, 0.0  ;;  %v6829_v30 = vadd.f32 %v2777_v47, %v8353_v3  ;;  %v5437_v3 = vld [vmem:[%s9418_s3 + $0x48] sm:$0xff] }
 0x266   : > { %v8561_v46 = vmul.f32 %v5375_v55, %v2968_v7  ;;  %v2940_v36 = vadd.f32 %v6828_v45, %v8485_v14  ;;  %v5436_v45 = vld [vmem:[%s9418_s3 + $0x40] sm:$0xff]  ;;  %vm3012_vm11 = vcmp.ge.s32.totalorder %v2998_v54, 0  ;;  %vm3022_vm15 = vcmp.lt.s32.totalorder %v2998_v54, 16 }
 0x267   : > { %v8567_v4 = vmul.f32 %v5374_v16, %v2967_v28  ;;  %v2939_v2 = vadd.f32 %v6829_v30, %v8485_v14  ;;  %v6431_v51 = vpop.f32.mrb[8].mxu0  ;;  %v3226_v47 = vsel %vm342_vm3, %v3223_v8, %v3225_v32  ;;  %v8584_v28 = vsel %vm973_vm2, %v3623_v49, %v3625_v37  ;;  %vm8652_vm5 = vmand %vm3012_vm11, %vm3022_vm15 }
 0x268   : > { %v3230_v30 = vrot.slane %v8561_v46, 1  ;;  %v2970_v39 = vmax.f32 %v2940_v36, 0.0  ;;  %v6830_v55 = vadd.f32 %v6431_v51, %v8359_v61  ;;  %v2787_v16 = vpop.f32.mrb[9].mxu0  ;;  %6471 = vmatmul.mubr.msk.f32.vlgmr.msra.gmra.mrb[30].mxu1 %vm3267_vm4, %v3226_v47  ;;  %v3227_v37 = vrot.slane %v8555_v6, 1  ;;  %vm3053_vm9 = vmand %vm8652_vm5, %vm3038_vm6 }
 0x269   : > { %v2969_v32 = vmax.f32 %v2939_v2, 0.0  ;;  %v6831_v8 = vadd.f32 %v2787_v16, %v8361_v18  ;;  %v3228_v49 = vrot.slane %v8567_v4, 1  ;;  %6761 = vmatpush3.bf16.msra.mxu1 %v8431_v26  ;;  %v8612_v9 = vpack.c.bf16 %v5437_v3, %v5436_v45  ;;  %vm3088_vm11 = vmand %vm8652_vm5, %vm3073_vm12 }
 0x26a   : > { %v8601_v61 = vmul.f32 %v5377_v0, %v2970_v39  ;;  %v2942_v63 = vadd.f32 %v6830_v55, %v8485_v14  ;;  %6763 = vmatprep.subr.bf16.mxu1 %v6762_v52  ;;  %v5378_v36 = vsel %vm8594_vm13, 1.0, %v9557_v19  ;;  %v2999_v47 = vadd.s32 5, %v8438_v22 }
 0x26b   : > { %v8614_v42 = vmul.f32 %v5376_v60, %v2969_v32  ;;  %v2941_v26 = vadd.f32 %v6831_v8, %v8485_v14  ;;  %v6434_v0 = vpop.f32.mrb[10].mxu0  ;;  %v8626_v35 = vsel %vm342_vm3, %v3227_v37, %v3228_v49  ;;  %v8629_v7 = vsel %vm342_vm3, %v3228_v49, %v3230_v30 }
 0x26c   : > { %v6832_v60 = vadd.f32 %v6434_v0, %v8367_v41  ;;  %v2797_v2 = vpop.f32.mrb[11].mxu0  ;;  %6473 = vmatprep.mubr.msk.f32.mxu1 %vm3267_vm4, %v8626_v35  ;;  %v3233_v51 = vrot.slane %v8601_v61, 1  ;;  %v2972_v45 = vmax.f32 %v2942_v63, 0.0  ;;  %v5379_v41 = vsel %vm8608_vm14, 1.0, %v9557_v19 }
 0x26d   : > { %v2971_v3 = vmax.f32 %v2941_v26, 0.0  ;;  %v6833_v39 = vadd.f32 %v2797_v2, %v8369_v20  ;;  %6474 = vmatmul.mubr.msk.f32.gmra.mrb[32].mxu1 %vm3267_vm4, %v8629_v7  ;;  %v3232_v30 = vrot.slane %v8614_v42, 1  ;;  %v5381_v16 = vsel %vm8621_vm0, 1.0, %v9557_v19 }
 0x26e   : > { %v2944_v55 = vadd.f32 %v6832_v60, %v8485_v14  ;;  %6765 = vmatpush3.bf16.msra.mxu1 %v6762_v52  ;;  %v5380_v29 = vsel %vm8572_vm10, 1.0, %v9557_v19  ;;  %vm3013_vm7 = vcmp.ge.s32.totalorder %v2999_v47, 0  ;;  %vm3023_vm8 = vcmp.lt.s32.totalorder %v2999_v47, 16 }
 0x26f   : > { %v8656_v20 = vmul.f32 %v5378_v36, %v2971_v3  ;;  %v2943_v8 = vadd.f32 %v6833_v39, %v8485_v14  ;;  %v6437_v37 = vpop.f32.mrb[12].mxu0  ;;  %v8663_v49 = vsel %vm342_vm3, %v3232_v30, %v3233_v51  ;;  %6767 = vmatprep.subr.bf16.mxu1 %v8612_v9  ;;  %v8669_v52 = vmul.f32 %v5379_v41, %v2972_v45  ;;  %vm8687_vm10 = vmand %vm3013_vm7, %vm3023_vm8 }
 0x270   : > { %v2974_v54 = vmax.f32 %v2944_v55, 0.0  ;;  %v6834_v63 = vadd.f32 %v6437_v37, %v8378_v44  ;;  %v2807_v18 = vpop.f32.mrb[13].mxu0  ;;  %6476 = vmatprep.mubr.msk.f32.mxu1 %vm3267_vm4, %v8663_v49  ;;  %v3000_v36 = vadd.s32 6, %v8438_v22  ;;  %v5383_v2 = vsel %vm8652_vm5, 1.0, %v9557_v19  ;;  %vm8713_vm13 = vmand %vm8687_vm10, %vm3038_vm6 }
 0x271   : > { %v3235_v11 = vrot.slane %v8656_v20, 1  ;;  %v2973_v26 = vmax.f32 %v2943_v8, 0.0  ;;  %v6835_v0 = vadd.f32 %v2807_v18, %v8380_v50  ;;  %v5382_v41 = vsel %vm3053_vm9, 1.0, %v9557_v19  ;;  %vm8724_vm0 = vmand %vm8687_vm10, %vm3073_vm12 }
 0x272   : > { %v8677_v59 = vmul.f32 %v5381_v16, %v2974_v54  ;;  %v2946_v44 = vadd.f32 %v6834_v63, %v8485_v14  ;;  %vm3014_vm14 = vcmp.ge.s32.totalorder %v3000_v36, 0  ;;  %vm3024_vm15 = vcmp.lt.s32.totalorder %v3000_v36, 16 }
 0x273   : > { %v8681_v60 = vmul.f32 %v5380_v29, %v2973_v26  ;;  %v2945_v47 = vadd.f32 %v6835_v0, %v8485_v14  ;;  %v6440_v50 = vpop.f32.mrb[14].mxu0  ;;  %v8692_v3 = vsel %vm342_vm3, %v3233_v51, %v3235_v11  ;;  %v3237_v51 = vrot.slane %v8669_v52, 1  ;;  %vm8753_vm5 = vmand %vm3014_vm14, %vm3024_vm15 }
 0x274   : > { %v3240_v39 = vrot.slane %v8677_v59, 1  ;;  %v2976_v30 = vmax.f32 %v2946_v44, 0.0  ;;  %v6836_v55 = vadd.f32 %v6440_v50, %v8389_v56  ;;  %v2817_v16 = vpop.f32.mrb[15].mxu0  ;;  %6477 = vmatmul.mubr.msk.f32.gmra.mrb[34].mxu1 %vm3267_vm4, %v8692_v3  ;;  %v5384_v44 = vsel %vm3088_vm11, 1.0, %v9557_v19  ;;  %vm3059_vm9 = vmand %vm8753_vm5, %vm3038_vm6 }
 0x275   : > { %v2975_v8 = vmax.f32 %v2945_v47, 0.0  ;;  %v6837_v29 = vadd.f32 %v2817_v16, %v8391_v62  ;;  %v3238_v37 = vrot.slane %v8681_v60, 1  ;;  %vm3094_vm11 = vmand %vm8753_vm5, %vm3073_vm12 }
 0x276   : > { %v8706_v54 = vmul.f32 %v5383_v2, %v2976_v30  ;;  %v2948_v56 = vadd.f32 %v6836_v55, %v8485_v14  ;;  %v3001_v30 = vadd.s32 7, %v8438_v22 }
 0x277   : > { %v8717_v62 = vmul.f32 %v5382_v41, %v2975_v8  ;;  %v2947_v32 = vadd.f32 %v6837_v29, %v8485_v14  ;;  %v6443_v18 = vpop.f32.mrb[16].mxu0  ;;  %v8729_v26 = vsel %vm342_vm3, %v3237_v51, %v3238_v37  ;;  %v8732_v0 = vsel %vm342_vm3, %v3238_v37, %v3240_v39 }
 0x278   : > { %v6838_v2 = vadd.f32 %v6443_v18, %v8396_v23  ;;  %v2827_v47 = vpop.f32.mrb[17].mxu0  ;;  %6479 = vmatprep.mubr.msk.f32.mxu1 %vm3267_vm4, %v8729_v26  ;;  %v3243_v50 = vrot.slane %v8706_v54, 1  ;;  %v2978_v41 = vmax.f32 %v2948_v56, 0.0  ;;  %v5385_v23 = vsel %vm8713_vm13, 1.0, %v9557_v19 }
 0x279   : > { %v2977_v55 = vmax.f32 %v2947_v32, 0.0  ;;  %v6839_v16 = vadd.f32 %v2827_v47, %v8398_v57  ;;  %6480 = vmatmul.mubr.msk.f32.gmra.mrb[36].mxu1 %vm3267_vm4, %v8732_v0  ;;  %v3242_v39 = vrot.slane %v8717_v62, 1  ;;  %v5387_v29 = vsel %vm8724_vm0, 1.0, %v9557_v19 }
 0x27a   : > { %v2950_v8 = vadd.f32 %v6838_v2, %v8485_v14  ;;  %v5386_v37 = vsel %vm8687_vm10, 1.0, %v9557_v19  ;;  %vm3015_vm7 = vcmp.ge.s32.totalorder %v3001_v30, 0  ;;  %vm3025_vm8 = vcmp.lt.s32.totalorder %v3001_v30, 16 }
 0x27b   : > { %v8757_v57 = vmul.f32 %v5384_v44, %v2977_v55  ;;  %v2949_v51 = vadd.f32 %v6839_v16, %v8485_v14  ;;  %v6446_v56 = vpop.f32.mrb[18].mxu0  ;;  %v8764_v63 = vsel %vm342_vm3, %v3242_v39, %v3243_v50  ;;  %v8769_v11 = vmul.f32 %v5385_v23, %v2978_v41  ;;  %vm8794_vm10 = vmand %vm3015_vm7, %vm3025_vm8 }
 0x27c   : > { %v2980_v32 = vmax.f32 %v2950_v8, 0.0  ;;  %v6840_v18 = vadd.f32 %v6446_v56, %v8401_v10  ;;  %v2837_v36 = vpop.f32.mrb[19].mxu0  ;;  %6482 = vmatprep.mubr.msk.f32.mxu1 %vm3267_vm4, %v8764_v63  ;;  %v5389_v41 = vsel %vm8753_vm5, 1.0, %v9557_v19  ;;  %vm8816_vm13 = vmand %vm8794_vm10, %vm3038_vm6 }
 0x27d   : > { %v3245_v44 = vrot.slane %v8757_v57, 1  ;;  %v2979_v2 = vmax.f32 %v2949_v51, 0.0  ;;  %v6841_v45 = vadd.f32 %v2837_v36, %v8403_v58  ;;  %vm3097_vm6 = vmand %vm8794_vm10, %vm3073_vm12  ;;  %v5391_v40 = vsel %vm8816_vm13, 1.0, %v9557_v19 }
 0x27e   : > { %v8777_v47 = vmul.f32 %v5387_v29, %v2980_v32  ;;  %v2952_v10 = vadd.f32 %v6840_v18, %v8485_v14  ;;  %v5388_v29 = vsel %vm3059_vm9, 1.0, %v9557_v19 }
 0x27f   : > { %v8780_v55 = vmul.f32 %v5386_v37, %v2979_v2  ;;  %v2951_v16 = vadd.f32 %v6841_v45, %v8485_v14  ;;  %v6449_v39 = vpop.f32.mrb[20].mxu0  ;;  %v8787_v58 = vsel %vm342_vm3, %v3243_v50, %v3245_v44 }
 0x280   : > { %v3250_v23 = vrot.slane %v8777_v47, 1  ;;  %v2982_v8 = vmax.f32 %v2952_v10, 0.0  ;;  %v6842_v51 = vadd.f32 %v6449_v39, %v8405_v1  ;;  %v2847_v56 = vpop.f32.mrb[21].mxu0  ;;  %6483 = vmatmul.mubr.msk.f32.gmra.mrb[38].mxu1 %vm3267_vm4, %v8787_v58  ;;  %v3247_v1 = vrot.slane %v8769_v11, 1 }
 0x281   : > { %v2981_v32 = vmax.f32 %v2951_v16, 0.0  ;;  %v6843_v50 = vadd.f32 %v2847_v56, %v8407_v5  ;;  %v3248_v30 = vrot.slane %v8780_v55, 1 }
 0x282   : > { %v8807_v18 = vmul.f32 %v5389_v41, %v2982_v8  ;;  %v2954_v36 = vadd.f32 %v6842_v51, %v8485_v14  ;;  %v5390_v41 = vsel %vm3094_vm11, 1.0, %v9557_v19 }
 0x283   : > { %v8810_v44 = vmul.f32 %v5388_v29, %v2981_v32  ;;  %v2953_v22 = vadd.f32 %v6843_v50, %v8485_v14  ;;  %v6452_v2 = vpop.f32.mrb[22].mxu0  ;;  %v8822_v45 = vsel %vm342_vm3, %v3247_v1, %v3248_v30  ;;  %v8825_v10 = vsel %vm342_vm3, %v3248_v30, %v3250_v23 }
 0x284   : > { %v6844_v16 = vadd.f32 %v6452_v2, %v8409_v15  ;;  %v2857_v12 = vpop.f32.mrb[23].mxu0  ;;  %6485 = vmatprep.mubr.msk.f32.mxu1 %vm3267_vm4, %v8822_v45  ;;  %v3253_v39 = vrot.slane %v8807_v18, 1  ;;  %v2984_v8 = vmax.f32 %v2954_v36, 0.0  ;;  %v5393_v32 = vsel %vm3097_vm6, 1.0, %v9557_v19 }
 0x285   : > { %v2983_v29 = vmax.f32 %v2953_v22, 0.0  ;;  %v6845_v23 = vadd.f32 %v2857_v12, %v8411_v17  ;;  %6486 = vmatmul.mubr.msk.f32.gmra.mrb[40].mxu1 %vm3267_vm4, %v8825_v10  ;;  %v3252_v15 = vrot.slane %v8810_v44, 1  ;;  %v5392_v36 = vsel %vm8794_vm10, 1.0, %v9557_v19 }
 0x286   : > { %v2956_v51 = vadd.f32 %v6844_v16, %v8485_v14  ;;  %v8857_v2 = vmul.f32 %v5391_v40, %v2984_v8 }
 0x287   : > { %v8844_v56 = vmul.f32 %v5390_v41, %v2983_v29  ;;  %v2955_v50 = vadd.f32 %v6845_v23, %v8485_v14  ;;  %v6455_v1 = vpop.f32.mrb[24].mxu0  ;;  %v8849_v17 = vsel %vm342_vm3, %v3252_v15, %v3253_v39 }
 0x288   : > { %v2986_v30 = vmax.f32 %v2956_v51, 0.0  ;;  %v6846_v5 = vadd.f32 %v6455_v1, %v8413_v24  ;;  %v2867_v22 = vpop.f32.mrb[25].mxu0  ;;  %6488 = vmatprep.mubr.msk.f32.mxu1 %vm3267_vm4, %v8849_v17  ;;  %v3257_v1 = vrot.slane %v8857_v2, 1 }
 0x289   : > { %v3255_v41 = vrot.slane %v8844_v56, 1  ;;  %v2985_v16 = vmax.f32 %v2955_v50, 0.0  ;;  %v6847_v12 = vadd.f32 %v2867_v22, %v8415_v27 }
 0x28a   : > { %v8861_v29 = vmul.f32 %v5393_v32, %v2986_v30  ;;  %v2958_v23 = vadd.f32 %v6846_v5, %v8485_v14 }
 0x28b   : > { %v8864_v15 = vmul.f32 %v5392_v36, %v2985_v16  ;;  %v2957_v19 = vadd.f32 %v6847_v12, %v8485_v14  ;;  %v6458_v24 = vpop.f32.mrb[26].mxu0  ;;  %v8868_v37 = vsel %vm342_vm3, %v3253_v39, %v3255_v41 }
 0x28c   : > { %v3260_v8 = vrot.slane %v8861_v29, 1  ;;  %v2988_v40 = vmax.f32 %v2958_v23, 0.0  ;;  %v6848_v51 = vadd.f32 %v6458_v24, %v8417_v31  ;;  %v2877_v50 = vpop.f32.mrb[27].mxu0  ;;  %6489 = vmatmul.mubr.msk.f32.gmra.mrb[42].mxu1 %vm3267_vm4, %v8868_v37 }
 0x28d   : > { %v2987_v27 = vmax.f32 %v2957_v19, 0.0  ;;  %v6849_v32 = vadd.f32 %v2877_v50, %v8419_v33  ;;  %v3258_v30 = vrot.slane %v8864_v15, 1 }
 0x28e   : > { %v8878_v36 = vmul.f32 %v8449_v25, %v2988_v40  ;;  %v2960_v39 = vadd.f32 %v6848_v51, %v8485_v14  ;;  %v5438_v25 = vld [vmem:[%s9418_s3 + $0x50] sm:$0xff] }
 0x28f   : > { %v8882_v5 = vmul.f32 %v8454_v21, %v2987_v27  ;;  %v2959_v31 = vadd.f32 %v6849_v32, %v8485_v14  ;;  %v6461_v22 = vpop.f32.mrb[28].mxu0  ;;  %v8886_v41 = vsel %vm342_vm3, %v3257_v1, %v3258_v30  ;;  %v8889_v33 = vsel %vm342_vm3, %v3258_v30, %v3260_v8  ;;  %v5439_v21 = vld [vmem:[%s9418_s3 + $0x58] sm:$0xff]  ;;  %v9585_v1 = vld [vmem:[#allocation24_spill] sm:$0xff] }
 0x290   : > { %v2990_v16 = vmax.f32 %v2960_v39, 0.0  ;;  %v6850_v12 = vadd.f32 %v6461_v22, %v8421_v38  ;;  %v2887_v23 = vpop.f32.mrb[29].mxu0  ;;  %6491 = vmatprep.mubr.msk.f32.mxu1 %vm3267_vm4, %v8886_v41  ;;  %v6770_v50 = vpack.c.bf16 %v5439_v21, %v5438_v25 }
 0x291   : > { %v2989_v19 = vmax.f32 %v2959_v31, 0.0  ;;  %v6851_v24 = vadd.f32 %v2887_v23, %v8423_v53  ;;  %6492 = vmatmul.mubr.msk.f32.gmra.mrb[44].mxu1 %vm3267_vm4, %v8889_v33  ;;  %v5456_v53 = vld [vmem:[%s9418_s3 + $0x60] sm:$0xff] }
 0x292   : > { %v8904_v38 = vmul.f32 %v8460_v34, %v2990_v16  ;;  %v2962_v8 = vadd.f32 %v6850_v12, %v8485_v14  ;;  %6502 = vmatprep.mubr.msk.f32.mxu1 %vm3267_vm4, %v8514_v48  ;;  %v5457_v34 = vld [vmem:[%s9418_s3 + $0x68] sm:$0xff]  ;;  %v9586_v48 = vld [vmem:[#allocation8_spill] sm:$0xff] }
 0x293   : > { %v8910_v40 = vmul.f32 %v8465_v43, %v2989_v19  ;;  %v2961_v51 = vadd.f32 %v6851_v24, %v8485_v14  ;;  %v9587_v43 = vld [vmem:[#allocation23_spill] sm:$0xff]  ;;  %v6774_v39 = vpack.c.bf16 %v5457_v34, %v5456_v53  ;;  %v3630_v34 = vrot.slane %v8561_v46, 2 }
 0x294   : > { %v2992_v27 = vmax.f32 %v2962_v8, 0.0  ;;  %v4556_v16 = vrot.slane %v8904_v38, 1  ;;  %v4731_v23 = vrot.slane %v8904_v38, 2  ;;  %v5458_v8 = vld [vmem:[%s9418_s3 + $0x70] sm:$0xff] }
 0x295   : > { %v2991_v32 = vmax.f32 %v2961_v51, 0.0  ;;  %6503 = vmatmul.mubr.msk.f32.vlgmr.msra.gmra.mrb[30].mxu1 %vm3267_vm4, %v9585_v1  ;;  %v5459_v51 = vld [vmem:[%s9418_s3 + $0x78] sm:$0xff]  ;;  %v5477_v1 = vld [vmem:[%s9418_s3 + $0x88] sm:$0xff] }
 0x296   : > { %v3193_v30 = vmul.f32 %v9586_v48, %v2992_v27  ;;  %6769 = vmatpush3.bf16.msra.mxu1 %v8612_v9  ;;  %6505 = vmatprep.mubr.msk.f32.mxu1 %vm3267_vm4, %v8555_v6  ;;  %v3627_v27 = vrot.slane %v8555_v6, 2  ;;  %v6778_v53 = vpack.c.bf16 %v5459_v51, %v5458_v8  ;;  %v3645_v8 = vrot.slane %v8757_v57, 2 }
 0x297   : > { %v8926_v14 = vmul.f32 %v9587_v43, %v2991_v32  ;;  %6771 = vmatprep.subr.bf16.mxu1 %v6770_v50  ;;  %v5476_v32 = vld [vmem:[%s9418_s3 + $0x80] sm:$0xff]  ;;  %v3635_v43 = vrot.slane %v8656_v20, 2  ;;  %v3640_v20 = vrot.slane %v8677_v59, 2 }
 0x298   : > { %v4559_v31 = vrot.slane %v3193_v30, 1  ;;  %v4734_v22 = vrot.slane %v3193_v30, 2  ;;  %v3633_v30 = vrot.slane %v8601_v61, 2  ;;  %v6782_v46 = vpack.c.bf16 %v5477_v1, %v5476_v32 }
 0x299   : > { %6506 = vmatmul.mubr.msk.f32.gmra.mrb[32].mxu1 %vm3267_vm4, %v8567_v4  ;;  %v4557_v12 = vrot.slane %v8926_v14, 1  ;;  %v4732_v9 = vrot.slane %v8926_v14, 2  ;;  %v3652_v32 = vrot.slane %v8810_v44, 2  ;;  %v3653_v1 = vrot.slane %v8807_v18, 2 }
 0x29a   : > { %6508 = vmatprep.mubr.msk.f32.mxu1 %vm3267_vm4, %v8614_v42  ;;  %6773 = vmatpush3.bf16.msra.mxu1 %v6770_v50  ;;  %v3628_v50 = vrot.slane %v8567_v4, 2 }
 0x29b   : > { %6775 = vmatprep.subr.bf16.mxu1 %v6774_v39  ;;  %v8937_v25 = vsel %vm342_vm3, %v4556_v16, %v4557_v12  ;;  %v8940_v21 = vsel %vm342_vm3, %v4557_v12, %v4559_v31  ;;  %v8943_v19 = vsel %vm973_vm2, %v4731_v23, %v4732_v9  ;;  %v8946_v24 = vsel %vm973_vm2, %v4732_v9, %v4734_v22 }
 0x29c   : > { %v8990_v48 = vsel %vm973_vm2, %v3627_v27, %v3628_v50  ;;  %v8998_v31 = vsel %vm973_vm2, %v3628_v50, %v3630_v34  ;;  %v3638_v22 = vrot.slane %v8681_v60, 2  ;;  %v9011_v16 = vsel %vm973_vm2, %v3633_v30, %v3635_v43 }
 0x29d   : > { %6509 = vmatmul.mubr.msk.f32.gmra.mrb[34].mxu1 %vm3267_vm4, %v8601_v61  ;;  %v3642_v23 = vrot.slane %v8717_v62, 2  ;;  %v3643_v9 = vrot.slane %v8706_v54, 2  ;;  %v3648_v50 = vrot.slane %v8780_v55, 2  ;;  %v3647_v27 = vrot.slane %v8769_v11, 2 }
 0x29e   : > { %6511 = vmatprep.mubr.msk.f32.mxu1 %vm3267_vm4, %v8669_v52  ;;  %v9024_v59 = vsel %vm973_vm2, %v3638_v22, %v3640_v20  ;;  %v3658_v43 = vrot.slane %v8864_v15, 2 }
 0x29f   : > { %v9029_v51 = vsel %vm973_vm2, %v3642_v23, %v3643_v9  ;;  %v9037_v57 = vsel %vm973_vm2, %v3643_v9, %v3645_v8  ;;  %v9042_v34 = vsel %vm973_vm2, %v3647_v27, %v3648_v50  ;;  %v5478_v9 = vld [vmem:[%s9418_s3 + $0x90] sm:$0xff]  ;;  %v5497_v27 = vld [vmem:[%s9418_s3 + $0xa8] sm:$0xff] }
 0x2a1   : > { %6512 = vmatmul.mubr.msk.f32.gmra.mrb[36].mxu1 %vm3267_vm4, %v8681_v60 }
 0x2a2   : > { %6514 = vmatprep.mubr.msk.f32.mxu1 %vm3267_vm4, %v8717_v62 }
 0x2a5   : > { %6515 = vmatmul.mubr.msk.f32.gmra.mrb[38].mxu1 %vm3267_vm4, %v8706_v54 }
 0x2a6   : > { %6517 = vmatprep.mubr.msk.f32.mxu1 %vm3267_vm4, %v8769_v11 }
 0x2a9   : > { %6518 = vmatmul.mubr.msk.f32.gmra.mrb[40].mxu1 %vm3267_vm4, %v8780_v55 }
 0x2aa   : > { %6520 = vmatprep.mubr.msk.f32.mxu1 %vm3267_vm4, %v8810_v44 }
 0x2ad   : > { %6521 = vmatmul.mubr.msk.f32.gmra.mrb[42].mxu1 %vm3267_vm4, %v8807_v18 }
 0x2ae   : > { %6523 = vmatprep.mubr.msk.f32.mxu1 %vm3267_vm4, %v8857_v2 }
 0x2b1   : > { %6524 = vmatmul.mubr.msk.f32.gmra.mrb[44].mxu1 %vm3267_vm4, %v8864_v15 }
 0x2b2   : > { %6534 = vmatprep.mubr.msk.f32.mxu1 %vm3267_vm4, %v8553_v13  ;;  %v3632_v13 = vrot.slane %v8614_v42, 2 }
 0x2b5   : > { %6535 = vmatmul.mubr.msk.f32.vlgmr.msra.gmra.mrb[30].mxu1 %vm3267_vm4, %v8584_v28  ;;  %v9003_v28 = vsel %vm973_vm2, %v3632_v13, %v3633_v30  ;;  %v3655_v13 = vrot.slane %v8844_v56, 2  ;;  %v9055_v30 = vsel %vm973_vm2, %v3652_v32, %v3653_v1  ;;  %v5516_v32 = vld [vmem:[%s9418_s3 + $0xc0] sm:$0xff] }
 0x2b6   : > { %6777 = vmatpush3.bf16.msra.mxu1 %v6774_v39  ;;  %6537 = vmatprep.mubr.msk.f32.mxu1 %vm3267_vm4, %v8990_v48  ;;  %v3637_v39 = vrot.slane %v8669_v52, 2 }
 0x2b7   : > { %6779 = vmatprep.subr.bf16.mxu1 %v6778_v53  ;;  %v9063_v56 = vsel %vm973_vm2, %v3653_v1, %v3655_v13  ;;  %v5517_v1 = vld [vmem:[%s9418_s3 + $0xc8] sm:$0xff] }
 0x2b8   : > { %v9016_v12 = vsel %vm973_vm2, %v3637_v39, %v3638_v22  ;;  %v3657_v22 = vrot.slane %v8857_v2, 2  ;;  %v3660_v39 = vrot.slane %v8861_v29, 2  ;;  %v5479_v29 = vld [vmem:[%s9418_s3 + $0x98] sm:$0xff]  ;;  %v6798_v13 = vpack.c.bf16 %v5517_v1, %v5516_v32  ;;  %v5538_v32 = vld [vmem:[%s9418_s3 + $0xf0] sm:$0xff] }
 0x2b9   : > { %6538 = vmatmul.mubr.msk.f32.gmra.mrb[32].mxu1 %vm3267_vm4, %v8998_v31  ;;  %v6786_v8 = vpack.c.bf16 %v5479_v29, %v5478_v9  ;;  %v5518_v9 = vld [vmem:[%s9418_s3 + $0xd0] sm:$0xff]  ;;  %v5519_v29 = vld [vmem:[%s9418_s3 + $0xd8] sm:$0xff] }
 0x2ba   : > { %6540 = vmatprep.mubr.msk.f32.mxu1 %vm3267_vm4, %v9003_v28  ;;  %6781 = vmatpush3.bf16.msra.mxu1 %v6778_v53  ;;  %v3650_v53 = vrot.slane %v8777_v47, 2  ;;  %v9068_v20 = vsel %vm973_vm2, %v3657_v22, %v3658_v43  ;;  %v9073_v23 = vsel %vm973_vm2, %v3658_v43, %v3660_v39  ;;  %v4036_v43 = vrot.slane %v8910_v40, 1 }
 0x2bb   : > { %6783 = vmatprep.subr.bf16.mxu1 %v6782_v46 }
 0x2bc   : > { %v9050_v47 = vsel %vm973_vm2, %v3648_v50, %v3650_v53  ;;  %v5496_v50 = vld [vmem:[%s9418_s3 + $0xa0] sm:$0xff] }
 0x2bd   : > { %6541 = vmatmul.mubr.msk.f32.gmra.mrb[34].mxu1 %vm3267_vm4, %v9011_v16  ;;  %v6790_v53 = vpack.c.bf16 %v5497_v27, %v5496_v50  ;;  %v5536_v50 = vld [vmem:[%s9418_s3 + $0xe0] sm:$0xff]  ;;  %v5537_v27 = vld [vmem:[%s9418_s3 + $0xe8] sm:$0xff] }
 0x2be   : > { %6543 = vmatprep.mubr.msk.f32.mxu1 %vm3267_vm4, %v9016_v12 }
 0x2c1   : > { %6544 = vmatmul.mubr.msk.f32.gmra.mrb[36].mxu1 %vm3267_vm4, %v9024_v59 }
 0x2c2   : > { %6546 = vmatprep.mubr.msk.f32.mxu1 %vm3267_vm4, %v9029_v51 }
 0x2c5   : > { %6547 = vmatmul.mubr.msk.f32.gmra.mrb[38].mxu1 %vm3267_vm4, %v9037_v57 }
 0x2c6   : > { %6549 = vmatprep.mubr.msk.f32.mxu1 %vm3267_vm4, %v9042_v34 }
 0x2c9   : > { %6550 = vmatmul.mubr.msk.f32.gmra.mrb[40].mxu1 %vm3267_vm4, %v9050_v47 }
 0x2ca   : > { %6552 = vmatprep.mubr.msk.f32.mxu1 %vm3267_vm4, %v9055_v30 }
 0x2cd   : > { %6553 = vmatmul.mubr.msk.f32.gmra.mrb[42].mxu1 %vm3267_vm4, %v9063_v56 }
 0x2ce   : > { %6555 = vmatprep.mubr.msk.f32.mxu1 %vm3267_vm4, %v9068_v20 }
 0x2d1   : > { %6556 = vmatmul.mubr.msk.f32.gmra.mrb[44].mxu1 %vm3267_vm4, %v9073_v23 }
 0x2d2   : > { %6566 = vmatprep.mubr.msk.f32.mxu1 %vm3267_vm4, %v8555_v6  ;;  %v5498_v6 = vld [vmem:[%s9418_s3 + $0xb0] sm:$0xff] }
 0x2d5   : > { %6567 = vmatmul.mubr.msk.f32.vlgmr.msra.gmra.mrb[30].mxu1 %vm3267_vm4, %v8567_v4  ;;  %v5499_v4 = vld [vmem:[%s9418_s3 + $0xb8] sm:$0xff] }
 0x2d6   : > { %6785 = vmatpush3.bf16.msra.mxu1 %v6782_v46  ;;  %6569 = vmatprep.mubr.msk.f32.mxu1 %vm3267_vm4, %v8614_v42  ;;  %v6794_v46 = vpack.c.bf16 %v5499_v4, %v5498_v6  ;;  %v4211_v6 = vrot.slane %v8910_v40, 2  ;;  %v5539_v40 = vld [vmem:[%s9418_s3 + $0xf8] sm:$0xff] }
 0x2d7   : > { %6787 = vmatprep.subr.bf16.mxu1 %v6786_v8  ;;  %v6810_v1 = vpack.c.bf16 %v5539_v40, %v5538_v32  ;;  %v9601_v32 = vld [vmem:[#allocation18_spill] sm:$0xff] }
 0x2d9   : > { %6570 = vmatmul.mubr.msk.f32.gmra.mrb[32].mxu1 %vm3267_vm4, %v8601_v61 }
 0x2da   : > { %6572 = vmatprep.mubr.msk.f32.mxu1 %vm3267_vm4, %v8669_v52  ;;  %6789 = vmatpush3.bf16.msra.mxu1 %v6786_v8  ;;  %v6802_v8 = vpack.c.bf16 %v5519_v29, %v5518_v9  ;;  %v9598_v29 = vld [vmem:[#allocation16_spill] sm:$0xff] }
 0x2db   : > { %6791 = vmatprep.subr.bf16.mxu1 %v6790_v53 }
 0x2dd   : > { %6573 = vmatmul.mubr.msk.f32.gmra.mrb[34].mxu1 %vm3267_vm4, %v8681_v60 }
 0x2de   : > { %6575 = vmatprep.mubr.msk.f32.mxu1 %vm3267_vm4, %v8717_v62 }
 0x2e1   : > { %6576 = vmatmul.mubr.msk.f32.gmra.mrb[36].mxu1 %vm3267_vm4, %v8706_v54 }
 0x2e2   : > { %6578 = vmatprep.mubr.msk.f32.mxu1 %vm3267_vm4, %v8769_v11 }
 0x2e5   : > { %6579 = vmatmul.mubr.msk.f32.gmra.mrb[38].mxu1 %vm3267_vm4, %v8780_v55 }
 0x2e6   : > { %6581 = vmatprep.mubr.msk.f32.mxu1 %vm3267_vm4, %v8810_v44 }
 0x2e9   : > { %6582 = vmatmul.mubr.msk.f32.gmra.mrb[40].mxu1 %vm3267_vm4, %v8807_v18 }
 0x2ea   : > { %6584 = vmatprep.mubr.msk.f32.mxu1 %vm3267_vm4, %v8857_v2 }
 0x2ed   : > { %6585 = vmatmul.mubr.msk.f32.gmra.mrb[42].mxu1 %vm3267_vm4, %v8864_v15 }
 0x2ee   : > { %6587 = vmatprep.mubr.msk.f32.mxu1 %vm3267_vm4, %v8882_v5 }
 0x2f1   : > { %6588 = vmatmul.mubr.msk.f32.gmra.mrb[44].mxu1 %vm3267_vm4, %v8878_v36 }
 0x2f2   : > { %6598 = vmatprep.mubr.msk.f32.mxu1 %vm3267_vm4, %v8626_v35  ;;  %v4033_v35 = vrot.slane %v8882_v5, 1 }
 0x2f5   : > { %6599 = vmatmul.mubr.msk.f32.vlgmr.msra.gmra.mrb[30].mxu1 %vm3267_vm4, %v8629_v7  ;;  %v4034_v7 = vrot.slane %v8878_v36, 1 }
 0x2f6   : > { %6793 = vmatpush3.bf16.msra.mxu1 %v6790_v53  ;;  %6601 = vmatprep.mubr.msk.f32.mxu1 %vm3267_vm4, %v8663_v49  ;;  %v6806_v53 = vpack.c.bf16 %v5537_v27, %v5536_v50  ;;  %v9599_v50 = vld [vmem:[#allocation15_spill] sm:$0xff] }
 0x2f7   : > { %6795 = vmatprep.subr.bf16.mxu1 %v6794_v46  ;;  %v9165_v22 = vsel %vm342_vm3, %v4033_v35, %v4034_v7  ;;  %v9170_v39 = vsel %vm342_vm3, %v4034_v7, %v4036_v43  ;;  %v5557_v35 = vld [vmem:[%s9418_s3 + $0x108] sm:$0xff] }
 0x2f9   : > { %6602 = vmatmul.mubr.msk.f32.gmra.mrb[32].mxu1 %vm3267_vm4, %v8692_v3 }
 0x2fa   : > { %6604 = vmatprep.mubr.msk.f32.mxu1 %vm3267_vm4, %v8729_v26  ;;  %6797 = vmatpush3.bf16.msra.mxu1 %v6794_v46 }
 0x2fb   : > { %6799 = vmatprep.subr.bf16.mxu1 %v6798_v13 }
 0x2fd   : > { %6605 = vmatmul.mubr.msk.f32.gmra.mrb[34].mxu1 %vm3267_vm4, %v8732_v0 }
 0x2fe   : > { %6607 = vmatprep.mubr.msk.f32.mxu1 %vm3267_vm4, %v8764_v63 }
 0x301   : > { %6608 = vmatmul.mubr.msk.f32.gmra.mrb[36].mxu1 %vm3267_vm4, %v8787_v58 }
 0x302   : > { %6610 = vmatprep.mubr.msk.f32.mxu1 %vm3267_vm4, %v8822_v45 }
 0x305   : > { %6611 = vmatmul.mubr.msk.f32.gmra.mrb[38].mxu1 %vm3267_vm4, %v8825_v10 }
 0x306   : > { %6613 = vmatprep.mubr.msk.f32.mxu1 %vm3267_vm4, %v8849_v17 }
 0x309   : > { %6614 = vmatmul.mubr.msk.f32.gmra.mrb[40].mxu1 %vm3267_vm4, %v8868_v37 }
 0x30a   : > { %6616 = vmatprep.mubr.msk.f32.mxu1 %vm3267_vm4, %v8886_v41 }
 0x30d   : > { %6617 = vmatmul.mubr.msk.f32.gmra.mrb[42].mxu1 %vm3267_vm4, %v8889_v33 }
 0x30e   : > { %6619 = vmatprep.mubr.msk.f32.mxu1 %vm3267_vm4, %v9165_v22 }
 0x311   : > { %6620 = vmatmul.mubr.msk.f32.gmra.mrb[44].mxu1 %vm3267_vm4, %v9170_v39 }
 0x312   : > { %6630 = vmatprep.mubr.msk.f32.mxu1 %vm3267_vm4, %v8990_v48  ;;  %v4208_v48 = vrot.slane %v8882_v5, 2 }
 0x315   : > { %6631 = vmatmul.mubr.msk.f32.vlgmr.msra.gmra.mrb[30].mxu1 %vm3267_vm4, %v8998_v31  ;;  %v4209_v31 = vrot.slane %v8878_v36, 2 }
 0x316   : > { %6801 = vmatpush3.bf16.msra.mxu1 %v6798_v13  ;;  %6633 = vmatprep.mubr.msk.f32.mxu1 %vm3267_vm4, %v9003_v28  ;;  %v5556_v13 = vld [vmem:[%s9418_s3 + $0x100] sm:$0xff] }
 0x317   : > { %6803 = vmatprep.subr.bf16.mxu1 %v6802_v8  ;;  %v9218_v4 = vsel %vm973_vm2, %v4208_v48, %v4209_v31  ;;  %v9223_v46 = vsel %vm973_vm2, %v4209_v31, %v4211_v6  ;;  %v6814_v7 = vpack.c.bf16 %v5557_v35, %v5556_v13 }
 0x319   : > { %6634 = vmatmul.mubr.msk.f32.gmra.mrb[32].mxu1 %vm3267_vm4, %v9011_v16 }
 0x31a   : > { %6636 = vmatprep.mubr.msk.f32.mxu1 %vm3267_vm4, %v9016_v12  ;;  %6805 = vmatpush3.bf16.msra.mxu1 %v6802_v8 }
 0x31b   : > { %6807 = vmatprep.subr.bf16.mxu1 %v6806_v53 }
 0x31d   : > { %6637 = vmatmul.mubr.msk.f32.gmra.mrb[34].mxu1 %vm3267_vm4, %v9024_v59 }
 0x31e   : > { %6639 = vmatprep.mubr.msk.f32.mxu1 %vm3267_vm4, %v9029_v51 }
 0x321   : > { %6640 = vmatmul.mubr.msk.f32.gmra.mrb[36].mxu1 %vm3267_vm4, %v9037_v57 }
 0x322   : > { %6642 = vmatprep.mubr.msk.f32.mxu1 %vm3267_vm4, %v9042_v34 }
 0x325   : > { %6643 = vmatmul.mubr.msk.f32.gmra.mrb[38].mxu1 %vm3267_vm4, %v9050_v47 }
 0x326   : > { %6645 = vmatprep.mubr.msk.f32.mxu1 %vm3267_vm4, %v9055_v30 }
 0x329   : > { %6646 = vmatmul.mubr.msk.f32.gmra.mrb[40].mxu1 %vm3267_vm4, %v9063_v56 }
 0x32a   : > { %6648 = vmatprep.mubr.msk.f32.mxu1 %vm3267_vm4, %v9068_v20 }
 0x32d   : > { %6649 = vmatmul.mubr.msk.f32.gmra.mrb[42].mxu1 %vm3267_vm4, %v9073_v23 }
 0x32e   : > { %6651 = vmatprep.mubr.msk.f32.mxu1 %vm3267_vm4, %v9218_v4 }
 0x331   : > { %6652 = vmatmul.mubr.msk.f32.gmra.mrb[44].mxu1 %vm3267_vm4, %v9223_v46 }
 0x332   : > { %6662 = vmatprep.mubr.msk.f32.mxu1 %vm3267_vm4, %v8614_v42  ;;  %v5559_v42 = vld [vmem:[%s9418_s3 + $0x118] sm:$0xff] }
 0x335   : > { %6663 = vmatmul.mubr.msk.f32.vlgmr.msra.gmra.mrb[30].mxu1 %vm3267_vm4, %v8601_v61  ;;  %v5558_v61 = vld [vmem:[%s9418_s3 + $0x110] sm:$0xff] }
 0x336   : > { %6809 = vmatpush3.bf16.msra.mxu1 %v6806_v53  ;;  %6665 = vmatprep.mubr.msk.f32.mxu1 %vm3267_vm4, %v8669_v52  ;;  %v6818_v52 = vpack.c.bf16 %v5559_v42, %v5558_v61  ;;  %v9602_v61 = vld [vmem:[#allocation22_spill] sm:$0xff] }
 0x337   : > { %6811 = vmatprep.subr.bf16.mxu1 %v6810_v1 }
 0x339   : > { %6666 = vmatmul.mubr.msk.f32.gmra.mrb[32].mxu1 %vm3267_vm4, %v8681_v60 }
 0x33a   : > { %6668 = vmatprep.mubr.msk.f32.mxu1 %vm3267_vm4, %v8717_v62  ;;  %6813 = vmatpush3.bf16.msra.mxu1 %v6810_v1 }
 0x33b   : > { %6815 = vmatprep.subr.bf16.mxu1 %v6814_v7 }
 0x33d   : > { %6669 = vmatmul.mubr.msk.f32.gmra.mrb[34].mxu1 %vm3267_vm4, %v8706_v54 }
 0x33e   : > { %6671 = vmatprep.mubr.msk.f32.mxu1 %vm3267_vm4, %v8769_v11 }
 0x341   : > { %6672 = vmatmul.mubr.msk.f32.gmra.mrb[36].mxu1 %vm3267_vm4, %v8780_v55 }
 0x342   : > { %6674 = vmatprep.mubr.msk.f32.mxu1 %vm3267_vm4, %v8810_v44 }
 0x345   : > { %6675 = vmatmul.mubr.msk.f32.gmra.mrb[38].mxu1 %vm3267_vm4, %v8807_v18 }
 0x346   : > { %6677 = vmatprep.mubr.msk.f32.mxu1 %vm3267_vm4, %v8857_v2 }
 0x349   : > { %6678 = vmatmul.mubr.msk.f32.gmra.mrb[40].mxu1 %vm3267_vm4, %v8864_v15 }
 0x34a   : > { %6680 = vmatprep.mubr.msk.f32.mxu1 %vm3267_vm4, %v8882_v5 }
 0x34d   : > { %6681 = vmatmul.mubr.msk.f32.gmra.mrb[42].mxu1 %vm3267_vm4, %v8878_v36 }
 0x34e   : > { %6683 = vmatprep.mubr.msk.f32.mxu1 %vm3267_vm4, %v8904_v38  ;;  %v9593_v38 = vld [vmem:[#allocation6_spill] sm:$0xff] }
 0x351   : > { %6684 = vmatmul.mubr.msk.f32.gmra.mrb[44].mxu1 %vm3267_vm4, %v8926_v14 }
 0x352   : > { %6694 = vmatprep.mubr.msk.f32.mxu1 %vm3267_vm4, %v8663_v49  ;;  %v5576_v49 = vld [vmem:[%s9419_s4] ss:$0 sm:$0xff] }
 0x355   : > { %6695 = vmatmul.mubr.msk.f32.vlgmr.msra.gmra.mrb[30].mxu1 %vm3267_vm4, %v8692_v3 }
 0x356   : > { %6817 = vmatpush3.bf16.msra.mxu1 %v6814_v7  ;;  %6697 = vmatprep.mubr.msk.f32.mxu1 %vm3267_vm4, %v8729_v26  ;;  %v9588_v26 = vld [vmem:[#allocation3_spill] sm:$0xff] }
 0x357   : > { %6819 = vmatprep.subr.bf16.mxu1 %v6818_v52 }
 0x359   : > { %6698 = vmatmul.mubr.msk.f32.gmra.mrb[32].mxu1 %vm3267_vm4, %v8732_v0 }
 0x35a   : > { %6700 = vmatprep.mubr.msk.f32.mxu1 %vm3267_vm4, %v8764_v63  ;;  %6821 = vmatpush3.bf16.msra.mxu1 %v6818_v52  ;;  %v9589_v63 = vld [vmem:[#allocation2_spill] sm:$0xff]  ;;  %v9603_v52 = vld [vmem:[#allocation21_spill] sm:$0xff] }
 0x35d   : > { %6701 = vmatmul.mubr.msk.f32.gmra.mrb[34].mxu1 %vm3267_vm4, %v8787_v58 }
 0x35e   : > { %6703 = vmatprep.mubr.msk.f32.mxu1 %vm3267_vm4, %v8822_v45  ;;  %v9590_v45 = vld [vmem:[#allocation5_spill] sm:$0xff] }
 0x361   : > { %6704 = vmatmul.mubr.msk.f32.gmra.mrb[36].mxu1 %vm3267_vm4, %v8825_v10 }
 0x362   : > { %6706 = vmatprep.mubr.msk.f32.mxu1 %vm3267_vm4, %v8849_v17  ;;  %v9591_v17 = vld [vmem:[#allocation4_spill] sm:$0xff] }
 0x365   : > { %6707 = vmatmul.mubr.msk.f32.gmra.mrb[38].mxu1 %vm3267_vm4, %v8868_v37 }
 0x366   : > { %6709 = vmatprep.mubr.msk.f32.mxu1 %vm3267_vm4, %v8886_v41  ;;  %v9592_v41 = vld [vmem:[#allocation7_spill] sm:$0xff] }
 0x369   : > { %6710 = vmatmul.mubr.msk.f32.gmra.mrb[40].mxu1 %vm3267_vm4, %v8889_v33 }
 0x36a   : > { %6712 = vmatprep.mubr.msk.f32.mxu1 %vm3267_vm4, %v9165_v22 }
 0x36d   : > { %6713 = vmatmul.mubr.msk.f32.gmra.mrb[42].mxu1 %vm3267_vm4, %v9170_v39 }
 0x36e   : > { %6715 = vmatprep.mubr.msk.f32.mxu1 %vm3267_vm4, %v8937_v25 }
 0x371   : > { %6716 = vmatmul.mubr.msk.f32.gmra.mrb[44].mxu1 %vm3267_vm4, %v8940_v21 }
 0x372   : > { %6726 = vmatprep.mubr.msk.f32.mxu1 %vm3267_vm4, %v9003_v28  ;;  %v9594_v28 = vld [vmem:[#allocation10_spill] sm:$0xff] }
 0x375   : > { %6727 = vmatmul.mubr.msk.f32.vlgmr.msra.gmra.mrb[30].mxu1 %vm3267_vm4, %v9011_v16 }
 0x376   : > { %6729 = vmatprep.mubr.msk.f32.mxu1 %vm3267_vm4, %v9016_v12  ;;  %v9595_v12 = vld [vmem:[#allocation9_spill] sm:$0xff] }
 0x379   : > { %6730 = vmatmul.mubr.msk.f32.gmra.mrb[32].mxu1 %vm3267_vm4, %v9024_v59 }
 0x37a   : > { %6732 = vmatprep.mubr.msk.f32.mxu1 %vm3267_vm4, %v9029_v51 }
 0x37d   : > { %6733 = vmatmul.mubr.msk.f32.gmra.mrb[34].mxu1 %vm3267_vm4, %v9037_v57 }
 0x37e   : > { %6735 = vmatprep.mubr.msk.f32.mxu1 %vm3267_vm4, %v9042_v34 }
 0x381   : > { %6736 = vmatmul.mubr.msk.f32.gmra.mrb[36].mxu1 %vm3267_vm4, %v9050_v47 }
 0x382   : > { %6738 = vmatprep.mubr.msk.f32.mxu1 %vm3267_vm4, %v9055_v30  ;;  %v9596_v30 = vld [vmem:[#allocation13_spill] sm:$0xff] }
 0x385   : > { %6739 = vmatmul.mubr.msk.f32.gmra.mrb[38].mxu1 %vm3267_vm4, %v9063_v56 }
 0x386   : > { %6741 = vmatprep.mubr.msk.f32.mxu1 %vm3267_vm4, %v9068_v20  ;;  %v9597_v20 = vld [vmem:[#allocation12_spill] sm:$0xff] }
 0x389   : > { %6742 = vmatmul.mubr.msk.f32.gmra.mrb[40].mxu1 %vm3267_vm4, %v9073_v23 }
 0x38a   : > { %6744 = vmatprep.mubr.msk.f32.mxu1 %vm3267_vm4, %v9218_v4  ;;  %v9600_v4 = vld [vmem:[#allocation19_spill] sm:$0xff] }
 0x38d   : > { %6745 = vmatmul.mubr.msk.f32.gmra.mrb[42].mxu1 %vm3267_vm4, %v9223_v46 }
 0x38e   : > { %6747 = vmatprep.mubr.msk.f32.mxu1 %vm3267_vm4, %v8943_v19 }
 0x391   : > { %6748 = vmatmul.mubr.msk.f32.gmra.mrb[44].mxu1 %vm3267_vm4, %v8946_v24 }
 0x448   : > { %v6728_v60 = vpop.f32.mrb[30].mxu1 }
 0x449   : > { %v4914_v3 = vadd.f32 %v6728_v60, %v5576_v49  ;;  %v4811_v54 = vpop.f32.mrb[31].mxu1 }
 0x44a   : > { %v4913_v62 = vadd.f32 %v5576_v49, %v4811_v54 }
 0x44b   : > { %v4946_v0 = vadd.f32 %v4914_v3, %v9588_v26 }
 0x44c   : > { %v4945_v11 = vadd.f32 %v4913_v62, %v9589_v63  ;;  %v6731_v55 = vpop.f32.mrb[32].mxu1 }
 0x44d   : > { %4962 = vst.msk [vmem:[%s9350_s17 + $0x8] sm:$0xff] %vm415_vm1, %v4946_v0  ;;  %v4916_v58 = vadd.f32 %v6731_v55, %v5576_v49  ;;  %v4821_v18 = vpop.f32.mrb[33].mxu1 }
 0x44e   : > { %4961 = vst.msk [vmem:[%s9350_s17] sm:$0xff] %vm415_vm1, %v4945_v11  ;;  %v4915_v44 = vadd.f32 %v5576_v49, %v4821_v18 }
 0x44f   : > { %v4948_v10 = vadd.f32 %v4916_v58, %v9590_v45 }
 0x450   : > { %v4947_v2 = vadd.f32 %v4915_v44, %v9591_v17  ;;  %v6734_v15 = vpop.f32.mrb[34].mxu1 }
 0x451   : > { %4964 = vst.msk [vmem:[%s9350_s17 + $0x18] sm:$0xff] %vm415_vm1, %v4948_v10  ;;  %v4918_v37 = vadd.f32 %v6734_v15, %v5576_v49  ;;  %v4831_v36 = vpop.f32.mrb[35].mxu1 }
 0x452   : > { %4963 = vst.msk [vmem:[%s9350_s17 + $0x10] sm:$0xff] %vm415_vm1, %v4947_v2  ;;  %v4917_v5 = vadd.f32 %v5576_v49, %v4831_v36 }
 0x453   : > { %v4950_v33 = vadd.f32 %v4918_v37, %v9592_v41 }
 0x454   : > { %v4949_v14 = vadd.f32 %v4917_v5, %v9593_v38  ;;  %v6737_v25 = vpop.f32.mrb[36].mxu1 }
 0x455   : > { %4966 = vst.msk [vmem:[%s9350_s17 + $0x28] sm:$0xff] %vm415_vm1, %v4950_v33  ;;  %v4920_v21 = vadd.f32 %v6737_v25, %v5576_v49  ;;  %v4841_v19 = vpop.f32.mrb[37].mxu1 }
 0x456   : > { %4965 = vst.msk [vmem:[%s9350_s17 + $0x20] sm:$0xff] %vm415_vm1, %v4949_v14  ;;  %v4919_v24 = vadd.f32 %v5576_v49, %v4841_v19 }
 0x457   : > { %v4952_v16 = vadd.f32 %v4920_v21, %v9594_v28 }
 0x458   : > { %v4951_v59 = vadd.f32 %v4919_v24, %v9595_v12  ;;  %v6740_v51 = vpop.f32.mrb[38].mxu1 }
 0x459   : > { %4968 = vst.msk [vmem:[%s9350_s17 + $0x38] sm:$0xff] %vm415_vm1, %v4952_v16  ;;  %v4922_v57 = vadd.f32 %v6740_v51, %v5576_v49  ;;  %v4851_v34 = vpop.f32.mrb[39].mxu1 }
 0x45a   : > { %4967 = vst.msk [vmem:[%s9350_s17 + $0x30] sm:$0xff] %vm415_vm1, %v4951_v59  ;;  %v4921_v47 = vadd.f32 %v5576_v49, %v4851_v34 }
 0x45b   : > { %v4954_v56 = vadd.f32 %v4922_v57, %v9596_v30 }
 0x45c   : > { %v4953_v23 = vadd.f32 %v4921_v47, %v9597_v20  ;;  %v6743_v43 = vpop.f32.mrb[40].mxu1 }
 0x45d   : > { %4970 = vst.msk [vmem:[%s9350_s17 + $0x48] sm:$0xff] %vm415_vm1, %v4954_v56  ;;  %v4924_v22 = vadd.f32 %v6743_v43, %v5576_v49  ;;  %v4861_v39 = vpop.f32.mrb[41].mxu1 }
 0x45e   : > { %4969 = vst.msk [vmem:[%s9350_s17 + $0x40] sm:$0xff] %vm415_vm1, %v4953_v23  ;;  %v4923_v9 = vadd.f32 %v5576_v49, %v4861_v39 }
 0x45f   : > { %v4956_v8 = vadd.f32 %v4924_v22, %v9598_v29 }
 0x460   : > { %v4955_v27 = vadd.f32 %v4923_v9, %v9599_v50  ;;  %v6746_v53 = vpop.f32.mrb[42].mxu1 }
 0x461   : > { %4972 = vst.msk [vmem:[%s9350_s17 + $0x58] sm:$0xff] %vm415_vm1, %v4956_v8  ;;  %v4926_v48 = vadd.f32 %v6746_v53, %v5576_v49  ;;  %v4871_v31 = vpop.f32.mrb[43].mxu1 }
 0x462   : > { %4971 = vst.msk [vmem:[%s9350_s17 + $0x50] sm:$0xff] %vm415_vm1, %v4955_v27  ;;  %v4925_v6 = vadd.f32 %v5576_v49, %v4871_v31 }
 0x463   : > { %v4958_v46 = vadd.f32 %v4926_v48, %v9600_v4 }
 0x464   : > { %v4957_v40 = vadd.f32 %v4925_v6, %v9601_v32  ;;  %v6749_v1 = vpop.f32.mrb[44].mxu1 }
 0x465   : > { %4974 = vst.msk [vmem:[%s9350_s17 + $0x68] sm:$0xff] %vm415_vm1, %v4958_v46  ;;  %v4928_v13 = vadd.f32 %v6749_v1, %v5576_v49  ;;  %v4881_v35 = vpop.f32.mrb[45].mxu1 }
 0x466   : > { %4973 = vst.msk [vmem:[%s9350_s17 + $0x60] sm:$0xff] %vm415_vm1, %v4957_v40  ;;  %v4927_v7 = vadd.f32 %v5576_v49, %v4881_v35 }
 0x467   : > { %v4960_v42 = vadd.f32 %v4928_v13, %v9602_v61 }
 0x468   : > { %v4959_v60 = vadd.f32 %v4927_v7, %v9603_v52 }
 0x469   : > { %4976 = vst.msk [vmem:[%s9350_s17 + $0x78] sm:$0xff] %vm415_vm1, %v4960_v42 }
 0x46a   : > { %4975 = vst.msk [vmem:[%s9350_s17 + $0x70] sm:$0xff] %vm415_vm1, %v4959_v60 }
 0x46b PF: > { %s15_s22 = sadd.s32 1, %s7270_s22   ;;  %s9604_s18 = smov %s7262_s20 }
 0x46c   : > { %p12_p7 = scmp.ge.s32.totalorder %s15_s22, 6   ;;  %s9605_s19 = smov %s7266_s21 }
 0x46d   : > { %s9606_s20 = smov %s9609_s23  ;;  %s9607_s21 = smov %s9613_s24 }
 0x46e   :  { %14 = sbr.rel (!%p12_p7) target bundleno = 3 (0x3), region = 87 }

</bundles_post_ra>
